<compile_context>
chip_gen: v6e
topology: v6e:2x2x1
jax: 0.10.0
libtpu: 0.0.40
codegen_flags: <defaults>
</compile_context>

<pallas_src>
import functools

import jax
import jax.numpy as jnp
from jax.experimental import pallas as pl
from jax.experimental.pallas import tpu as pltpu

EPS = 1e-5
MXU_DTYPE = jnp.float32          # drop-in: jnp.bfloat16 on v6e/v7x (re-check tolerance)
VMEM_LIMIT = 48 * 1024 * 1024    # fits v7x (64 MiB physical), ample headroom on v5e/v6e
TARGET_BLOCK_BYTES = 1 << 20     # ~1 MiB activation lane blocks


# --------------------------------------------------------------------------- specs
def _const_spec2(shape):
    nd = len(shape)
    return pl.BlockSpec(shape, lambda c, i: (0,) * nd)


def _const_spec1(shape):
    nd = len(shape)
    return pl.BlockSpec(shape, lambda i: (0,) * nd)


def _act_spec2(ch, lane_len, inner):
    return pl.BlockSpec((ch, lane_len), lambda c, i: (0, c * inner + i))


def _act_spec1(ch, lane_len):
    return pl.BlockSpec((ch, lane_len), lambda i: (0, i))


def _stats_out_spec(ch):
    return pl.BlockSpec((1, ch, 2), lambda c, i: (c, 0, 0))


# ------------------------------------------------------------------------- helpers
def _bn_apply(y, stats_ref, bnp, inv_count, relu):
    """y: (C, L); stats_ref: (n_cores, C, 2) = per-core [sum, sumsq]; bnp: (C, 2)."""
    stats = stats_ref[0]
    for k in range(1, stats_ref.shape[0]):          # fold per-core partials (<=2 adds)
        stats = stats + stats_ref[k]
    mean = stats[:, 0:1] * inv_count
    # NOTE: single-pass variance (E[x^2]-mean^2) in f32; matches reference at these
    # scales.  For very large activations a shifted/two-pass accumulation is safer.
    var = stats[:, 1:2] * inv_count - mean * mean
    out = (y - mean) * jax.lax.rsqrt(var + EPS) * bnp[:, 0:1] + bnp[:, 1:2]
    if relu:
        out = jnp.maximum(out, 0.0)
    return out


def _accumulate_stats(y, stats_ref):
    """Accumulate per-channel [sum, sumsq] into the resident (1, C, 2) output block."""
    s = jnp.sum(y, axis=1, keepdims=True)            # (C, 1)
    ss = jnp.sum(y * y, axis=1, keepdims=True)       # (C, 1)
    tile = jnp.concatenate([s, ss], axis=1)          # (C, 2)

    @pl.when(pl.program_id(1) == 0)
    def _():
        stats_ref[0] = jnp.zeros_like(tile)

    stats_ref[0] += tile


def _make_border_masks(img_h, img_w, ipb):
    """(9, ipb*H*W) f32 0/1 masks, one per 3x3 tap, repeated per image in the block."""
    p = jnp.arange(img_h * img_w, dtype=jnp.int32)
    hh = p // img_w
    ww = p % img_w
    rows = []
    for dy in (-1, 0, 1):
        for dx in (-1, 0, 1):
            ok = (hh + dy >= 0) & (hh + dy < img_h) & (ww + dx >= 0) & (ww + dx < img_w)
            rows.append(ok)
    m = jnp.stack(rows, axis=0).astype(jnp.float32)  # (9, P)
    return jnp.tile(m, (1, ipb))                     # (9, L)


def _choose_images_per_block(n, ch, p, target_bytes=TARGET_BLOCK_BYTES):
    ipb = max(1, min(n, target_bytes // max(1, ch * p * 4)))
    while n % ipb != 0:
        ipb -= 1
    return ipb


# ------------------------------------------------------------------------- kernels
def _conv1x1_stats_kernel(x_ref, w_ref, y_ref, stats_ref):
    y = jnp.dot(w_ref[...].astype(MXU_DTYPE), x_ref[...].astype(MXU_DTYPE),
                preferred_element_type=jnp.float32)           # (Cout, L)
    y_ref[...] = y
    _accumulate_stats(y, stats_ref)


def _bn_conv3x3_stats_kernel(img_w, lane_len, inv_count,
                             y_ref, stats_in_ref, bnp_ref, w_ref, mask_ref,
                             o_ref, stats_ref):
    a = _bn_apply(y_ref[...], stats_in_ref, bnp_ref[...], inv_count, relu=True)  # (C, L)
    cout = w_ref.shape[1]
    acc = jnp.zeros((cout, a.shape[1]), jnp.float32)
    t = 0
    for dy in (-1, 0, 1):
        for dx in (-1, 0, 1):
            s = dy * img_w + dx
            shifted = a if s == 0 else pltpu.roll(a, shift=(-s) % lane_len, axis=1)
            masked = shifted * mask_ref[pl.ds(t, 1), :]       # (C, L); kills borders/wrap
            acc = acc + jnp.dot(w_ref[t].astype(MXU_DTYPE), masked.astype(MXU_DTYPE),
                                preferred_element_type=jnp.float32)
            t += 1
    o_ref[...] = acc
    _accumulate_stats(acc, stats_ref)


def _bn_conv1x1_stats_kernel(inv_count,
                             y_ref, stats_in_ref, bnp_ref, w_ref, o_ref, stats_ref):
    a = _bn_apply(y_ref[...], stats_in_ref, bnp_ref[...], inv_count, relu=True)
    z = jnp.dot(w_ref[...].astype(MXU_DTYPE), a.astype(MXU_DTYPE),
                preferred_element_type=jnp.float32)           # (Cout, L)
    o_ref[...] = z
    _accumulate_stats(z, stats_ref)


def _bn_residual_kernel(inv_count, y_ref, stats_in_ref, bnp_ref, x_ref, o_ref):
    z = _bn_apply(y_ref[...], stats_in_ref, bnp_ref[...], inv_count, relu=False)
    o_ref[...] = jnp.maximum(z + x_ref[...], 0.0)


# ------------------------------------------------------------------------- wrapper
def bottleneck_forward(x_nchw, params):
    """x_nchw: (N, Cin, H, W) f32 -> (N, Cout, H, W) f32 (training-mode BatchNorm)."""
    w1, bnp1, w2, bnp2, w3, bnp3 = params
    N, Cin, H, W = x_nchw.shape
    P = H * W
    width = w1.shape[0]
    Cout = w3.shape[0]
    assert Cin == Cout, "identity residual (downsample=None) requires inchns == outchns"
    # TODO(synk): pad H*W to a multiple of 128 (e.g. 56*56) to keep stores lane-dense.
    assert P % 128 == 0, "H*W must be a multiple of 128 for lane-dense blocks"

    Ltot = N * P
    inv_count = 1.0 / float(Ltot)

    ipb = _choose_images_per_block(N, max(Cin, width, Cout), P)
    L = ipb * P                      # lane block = whole images -> roll wrap is masked
    n_blocks = N // ipb
    n_cores = 2 if (n_blocks % 2 == 0 and n_blocks >= 2) else 1
    inner = n_blocks // n_cores

    # One-time relayout to lane-dense (C, N*P); done by XLA outside the kernels.
    x = jnp.transpose(x_nchw, (1, 0, 2, 3)).reshape(Cin, Ltot).astype(jnp.float32)
    mask = _make_border_masks(H, W, ipb)             # (9, L), resident constant input

    cp_conv = pltpu.CompilerParams(dimension_semantics=("parallel", "arbitrary"),
                                   vmem_limit_bytes=VMEM_LIMIT)
    cp_res = pltpu.CompilerParams(dimension_semantics=("parallel",),
                                  vmem_limit_bytes=VMEM_LIMIT)

    # --- conv1 (1x1) + batch stats ---------------------------------------------------
    y1, stats1 = pl.pallas_call(
        _conv1x1_stats_kernel,
        grid=(n_cores, inner),
        in_specs=[_act_spec2(Cin, L, inner), _const_spec2(w1.shape)],
        out_specs=(_act_spec2(width, L, inner), _stats_out_spec(width)),
        out_shape=(jax.ShapeDtypeStruct((width, Ltot), jnp.float32),
                   jax.ShapeDtypeStruct((n_cores, width, 2), jnp.float32)),
        compiler_params=cp_conv,
        cost_estimate=pl.CostEstimate(flops=2 * Ltot * Cin * width,
                                      transcendentals=0,
                                      bytes_accessed=4 * Ltot * (Cin + width)),
    )(x, w1)

    # --- bn1 + relu + conv2 (3x3, per-tap roll/mask accumulating matmuls) + stats ----
    y2, stats2 = pl.pallas_call(
        functools.partial(_bn_conv3x3_stats_kernel, W, L, inv_count),
        grid=(n_cores, inner),
        in_specs=[_act_spec2(width, L, inner), _const_spec2((n_cores, width, 2)),
                  _const_spec2((width, 2)), _const_spec2(w2.shape),
                  _const_spec2(mask.shape)],
        out_specs=(_act_spec2(width, L, inner), _stats_out_spec(width)),
        out_shape=(jax.ShapeDtypeStruct((width, Ltot), jnp.float32),
                   jax.ShapeDtypeStruct((n_cores, width, 2), jnp.float32)),
        compiler_params=cp_conv,
        cost_estimate=pl.CostEstimate(flops=2 * Ltot * 9 * width * width,
                                      transcendentals=width,
                                      bytes_accessed=4 * Ltot * 2 * width + 4 * 9 * L),
    )(y1, stats1, bnp1, w2, mask)

    # --- bn2 + relu + conv3 (1x1) + stats ---------------------------------------------
    y3, stats3 = pl.pallas_call(
        functools.partial(_bn_conv1x1_stats_kernel, inv_count),
        grid=(n_cores, inner),
        in_specs=[_act_spec2(width, L, inner), _const_spec2((n_cores, width, 2)),
                  _const_spec2((width, 2)), _const_spec2(w3.shape)],
        out_specs=(_act_spec2(Cout, L, inner), _stats_out_spec(Cout)),
        out_shape=(jax.ShapeDtypeStruct((Cout, Ltot), jnp.float32),
                   jax.ShapeDtypeStruct((n_cores, Cout, 2), jnp.float32)),
        compiler_params=cp_conv,
        cost_estimate=pl.CostEstimate(flops=2 * Ltot * width * Cout,
                                      transcendentals=width,
                                      bytes_accessed=4 * Ltot * (width + Cout)),
    )(y2, stats2, bnp2, w3)

    # --- bn3 + identity residual + relu -----------------------------------------------
    out = pl.pallas_call(
        functools.partial(_bn_residual_kernel, inv_count),
        grid=(n_blocks,),
        in_specs=[_act_spec1(Cout, L), _const_spec1((n_cores, Cout, 2)),
                  _const_spec1((Cout, 2)), _act_spec1(Cin, L)],
        out_specs=_act_spec1(Cout, L),
        out_shape=jax.ShapeDtypeStruct((Cout, Ltot), jnp.float32),
        compiler_params=cp_res,
        cost_estimate=pl.CostEstimate(flops=6 * Ltot * Cout,
                                      transcendentals=Cout,
                                      bytes_accessed=4 * Ltot * 3 * Cout),
    )(y3, stats3, bnp3, x)

    return jnp.transpose(out.reshape(Cout, N, H, W), (1, 0, 2, 3))


# --------------------------------------------------------------------------- params
def make_params(key, inchns, outchns):
    """PyTorch-style parameters: conv weights (O, I, kH, kW), BN gamma/beta vectors."""
    width = outchns                      # width = int(outchns*(64/64.))*1, expansion=1
    ks = jax.random.split(key, 9)
    w1_pt = 0.2 * jax.random.normal(ks[0], (width, inchns, 1, 1), jnp.float32)
    w2_pt = 0.2 * jax.random.normal(ks[1], (width, width, 3, 3), jnp.float32)
    w3_pt = 0.2 * jax.random.normal(ks[2], (outchns, width, 1, 1), jnp.float32)
    g1 = 1.0 + 0.1 * jax.random.normal(ks[3], (width,), jnp.float32)
    b1 = 0.1 * jax.random.normal(ks[4], (width,), jnp.float32)
    g2 = 1.0 + 0.1 * jax.random.normal(ks[5], (width,), jnp.float32)
    b2 = 0.1 * jax.random.normal(ks[6], (width,), jnp.float32)
    g3 = 1.0 + 0.1 * jax.random.normal(ks[7], (outchns,), jnp.float32)
    b3 = 0.1 * jax.random.normal(ks[8], (outchns,), jnp.float32)
    return (w1_pt, w2_pt, w3_pt, g1, b1, g2, b2, g3, b3)


def prepare_kernel_params(pt_params):
    """Re-layout PyTorch-style parameters for the Pallas kernels (one-time host prep)."""
    w1_pt, w2_pt, w3_pt, g1, b1, g2, b2, g3, b3 = pt_params
    width = w1_pt.shape[0]
    outchns = w3_pt.shape[0]
    w1 = w1_pt[:, :, 0, 0]                                           # (width, Cin)
    # (O, I, 3, 3) -> (ky, kx, O, I) -> (9, O, I); row t = (dy+1)*3 + (dx+1) matches the
    # tap enumeration order (dy, dx row-major) in _bn_conv3x3_stats_kernel.
    w2 = jnp.transpose(w2_pt, (2, 3, 0, 1)).reshape(9, width, width)
    w3 = w3_pt[:, :, 0, 0]                                           # (Cout, width)
    bnp1 = jnp.stack([g1, b1], axis=1)                               # (width, 2)
    bnp2 = jnp.stack([g2, b2], axis=1)
    bnp3 = jnp.stack([g3, b3], axis=1)                               # (Cout, 2)
    return (w1, bnp1, w2, bnp2, w3, bnp3)


# ------------------------------------------------------------------------ reference
def reference_forward(x_nchw, pt_params):
    """Pure-JAX reference (lax convs) with identical training-mode BN math."""
    w1_pt, w2_pt, w3_pt, g1, b1, g2, b2, g3, b3 = pt_params

    def bn(y, g, bta, relu):
        mean = jnp.mean(y, axis=(0, 2, 3), keepdims=True)
        var = jnp.mean((y - mean) ** 2, axis=(0, 2, 3), keepdims=True)
        out = (y - mean) * jax.lax.rsqrt(var + EPS)
        out = out * g.reshape(1, -1, 1, 1) + bta.reshape(1, -1, 1, 1)
        return jnp.maximum(out, 0.0) if relu else out

    def conv(x, w_oihw, pad):
        return jax.lax.conv_general_dilated(
            x, w_oihw, (1, 1), [(pad, pad), (pad, pad)],
            dimension_numbers=("NCHW", "OIHW", "NCHW"))

    y = bn(conv(x_nchw, w1_pt, 0), g1, b1, relu=True)
    y = bn(conv(y, w2_pt, 1), g2, b2, relu=True)
    y = bn(conv(y, w3_pt, 0), g3, b3, relu=False)
    return jnp.maximum(y + x_nchw, 0.0)


if __name__ == "__main__":
    key = jax.random.PRNGKey(0)
    kx, kp = jax.random.split(key)

    N, C, H, W = 2, 4, 16, 16      # inchns == outchns (identity path, no downsample)
    x = jax.random.normal(kx, (N, C, H, W), jnp.float32)
    pt_params = make_params(kp, inchns=C, outchns=C)
    k_params = prepare_kernel_params(pt_params)

    fwd = jax.jit(bottleneck_forward)
    out = jax.block_until_ready(fwd(x, k_params))
    ref = jax.block_until_ready(reference_forward(x, pt_params))

    if not bool(jnp.allclose(out, ref, atol=1e-4, rtol=1e-4)):
        raise AssertionError("Pallas Bottleneck output mismatch vs JAX reference")

    print("KERNEL_OK")
</pallas_src>

<mosaic_0001>
module attributes {stable_mosaic.version = 11 : i64} {
  func.func @_conv1x1_stats_kernel(%arg0: i32, %arg1: i32, %arg2: memref<4x512xf32, #tpu.memory_space<vmem>>, %arg3: memref<4x4xf32, #tpu.memory_space<vmem>>, %arg4: memref<4x512xf32, #tpu.memory_space<vmem>>, %arg5: memref<1x4x2xf32, #tpu.memory_space<vmem>>) attributes {dimension_semantics = [#tpu.dimension_semantics<parallel>, #tpu.dimension_semantics<arbitrary>], iteration_bounds = array<i64: 1, 1>, scalar_prefetch = 0 : i64, scratch_operands = 0 : i64, tpu.core_type = #tpu.core_type<tc>, window_params = [{transform_indices = @transform_0, window_bounds = array<i64: 4, 512>}, {pipeline_mode = #tpu.pipeline_mode<synchronous>, transform_indices = @transform_1, window_bounds = array<i64: 4, 4>}, {transform_indices = @transform_2, window_bounds = array<i64: 4, 512>}, {transform_indices = @transform_3, window_bounds = array<i64: 1, 4, 2>}]} {
    %c0 = arith.constant 0 : index
    %c0_0 = arith.constant 0 : index
    %0 = vector.load %arg3[%c0, %c0_0] : memref<4x4xf32, #tpu.memory_space<vmem>>, vector<4x4xf32>
    %c0_1 = arith.constant 0 : index
    %c0_2 = arith.constant 0 : index
    %1 = vector.load %arg2[%c0_1, %c0_2] : memref<4x512xf32, #tpu.memory_space<vmem>>, vector<4x512xf32>
    %cst = arith.constant dense<0.000000e+00> : vector<4x512xf32>
    %2 = tpu.matmul %0, %1, %cst {dimension_numbers = #tpu.dot_dimension_numbers<[1], [0], [0], [1], [0, 0, 1, 1], [], []>} : vector<4x4xf32>, vector<4x512xf32>, vector<4x512xf32> -> vector<4x512xf32>
    %c0_3 = arith.constant 0 : index
    %c0_4 = arith.constant 0 : index
    %3 = vector.load %arg4[%c0_3, %c0_4] : memref<4x512xf32, #tpu.memory_space<vmem>>, vector<4x512xf32>
    tpu.vector_store %arg4[%c0_3, %c0_4], %2 {strides = array<i32>} : memref<4x512xf32, #tpu.memory_space<vmem>>, vector<4x512xf32>,
    %cst_5 = arith.constant dense<0.000000e+00> : vector<4xf32>
    %4 = vector.multi_reduction <add>, %2, %cst_5 [1] : vector<4x512xf32> to vector<4xf32>
    %5 = vector.shape_cast %4 : vector<4xf32> to vector<4x1xf32>
    %6 = arith.mulf %2, %2 : vector<4x512xf32>
    %cst_6 = arith.constant dense<0.000000e+00> : vector<4xf32>
    %7 = vector.multi_reduction <add>, %6, %cst_6 [1] : vector<4x512xf32> to vector<4xf32>
    %8 = vector.shape_cast %7 : vector<4xf32> to vector<4x1xf32>
    %9 = tpu.concatenate %5, %8 in 1 : vector<4x1xf32>, vector<4x1xf32> -> vector<4x2xf32>
    %c0_i32 = arith.constant 0 : i32
    %10 = arith.cmpi eq, %arg1, %c0_i32 : i32
    %11 = arith.extui %10 : i1 to i32
    %c0_i32_7 = arith.constant 0 : i32
    %12 = arith.cmpi ne, %11, %c0_i32_7 : i32
    scf.if %12 {
      %cst_14 = arith.constant 0.000000e+00 : f32
      %19 = vector.broadcast %cst_14 : f32 to vector<4x2xf32>
      %c0_15 = arith.constant 0 : index
      %c0_16 = arith.constant 0 : index
      %c0_17 = arith.constant 0 : index
      %20 = vector.load %arg5[%c0_15, %c0_16, %c0_17] : memref<1x4x2xf32, #tpu.memory_space<vmem>>, vector<1x4x2xf32>
      %21 = vector.shape_cast %20 : vector<1x4x2xf32> to vector<4x2xf32>
      %22 = vector.shape_cast %19 : vector<4x2xf32> to vector<1x4x2xf32>
      tpu.vector_store %arg5[%c0_15, %c0_16, %c0_17], %22 {strides = array<i32>} : memref<1x4x2xf32, #tpu.memory_space<vmem>>, vector<1x4x2xf32>,
    } else {
    }
    %c0_8 = arith.constant 0 : index
    %c0_9 = arith.constant 0 : index
    %c0_10 = arith.constant 0 : index
    %13 = vector.load %arg5[%c0_8, %c0_9, %c0_10] : memref<1x4x2xf32, #tpu.memory_space<vmem>>, vector<1x4x2xf32>
    %14 = vector.shape_cast %13 : vector<1x4x2xf32> to vector<4x2xf32>
    %15 = arith.addf %14, %9 : vector<4x2xf32>
    %c0_11 = arith.constant 0 : index
    %c0_12 = arith.constant 0 : index
    %c0_13 = arith.constant 0 : index
    %16 = vector.load %arg5[%c0_11, %c0_12, %c0_13] : memref<1x4x2xf32, #tpu.memory_space<vmem>>, vector<1x4x2xf32>
    %17 = vector.shape_cast %16 : vector<1x4x2xf32> to vector<4x2xf32>
    %18 = vector.shape_cast %15 : vector<4x2xf32> to vector<1x4x2xf32>
    tpu.vector_store %arg5[%c0_11, %c0_12, %c0_13], %18 {strides = array<i32>} : memref<1x4x2xf32, #tpu.memory_space<vmem>>, vector<1x4x2xf32>,
    return
  }
  func.func @transform_0(%arg0: i32, %arg1: i32) -> (i32, i32) {
    %c1_i32 = arith.constant 1 : i32
    %0 = arith.muli %arg0, %c1_i32 : i32
    %1 = arith.addi %0, %arg1 : i32
    %c0_i32 = arith.constant 0 : i32
    %c0_i32_0 = arith.constant 0 : i32
    return %c0_i32, %1 : i32, i32
  }
  func.func @transform_1(%arg0: i32, %arg1: i32) -> (i32, i32) {
    %c0_i32 = arith.constant 0 : i32
    %c0_i32_0 = arith.constant 0 : i32
    %c0_i32_1 = arith.constant 0 : i32
    return %c0_i32, %c0_i32_0 : i32, i32
  }
  func.func @transform_2(%arg0: i32, %arg1: i32) -> (i32, i32) {
    %c1_i32 = arith.constant 1 : i32
    %0 = arith.muli %arg0, %c1_i32 : i32
    %1 = arith.addi %0, %arg1 : i32
    %c0_i32 = arith.constant 0 : i32
    %c0_i32_0 = arith.constant 0 : i32
    return %c0_i32, %1 : i32, i32
  }
  func.func @transform_3(%arg0: i32, %arg1: i32) -> (i32, i32, i32) {
    %c0_i32 = arith.constant 0 : i32
    %c0_i32_0 = arith.constant 0 : i32
    %c0_i32_1 = arith.constant 0 : i32
    return %arg0, %c0_i32, %c0_i32_0 : i32, i32, i32
  }
}

module attributes {stable_mosaic.version = 11 : i64} {
  func.func @_bn_residual_kernel(%arg0: i32, %arg1: memref<4x512xf32, #tpu.memory_space<vmem>>, %arg2: memref<1x4x2xf32, #tpu.memory_space<vmem>>, %arg3: memref<4x2xf32, #tpu.memory_space<vmem>>, %arg4: memref<4x512xf32, #tpu.memory_space<vmem>>, %arg5: memref<4x512xf32, #tpu.memory_space<vmem>>) attributes {dimension_semantics = [#tpu.dimension_semantics<parallel>], iteration_bounds = array<i64: 1>, scalar_prefetch = 0 : i64, scratch_operands = 0 : i64, tpu.core_type = #tpu.core_type<tc>, window_params = [{transform_indices = @transform_0, window_bounds = array<i64: 4, 512>}, {pipeline_mode = #tpu.pipeline_mode<synchronous>, transform_indices = @transform_1, window_bounds = array<i64: 1, 4, 2>}, {pipeline_mode = #tpu.pipeline_mode<synchronous>, transform_indices = @transform_2, window_bounds = array<i64: 4, 2>}, {transform_indices = @transform_3, window_bounds = array<i64: 4, 512>}, {transform_indices = @transform_4, window_bounds = array<i64: 4, 512>}]} {
    %c0 = arith.constant 0 : index
    %c0_0 = arith.constant 0 : index
    %0 = vector.load %arg1[%c0, %c0_0] : memref<4x512xf32, #tpu.memory_space<vmem>>, vector<4x512xf32>
    %c0_1 = arith.constant 0 : index
    %c0_2 = arith.constant 0 : index
    %1 = vector.load %arg3[%c0_1, %c0_2] : memref<4x2xf32, #tpu.memory_space<vmem>>, vector<4x2xf32>
    %c0_3 = arith.constant 0 : index
    %c0_4 = arith.constant 0 : index
    %c0_5 = arith.constant 0 : index
    %2 = vector.load %arg2[%c0_3, %c0_4, %c0_5] : memref<1x4x2xf32, #tpu.memory_space<vmem>>, vector<1x4x2xf32>
    %3 = vector.shape_cast %2 : vector<1x4x2xf32> to vector<4x2xf32>
    %4 = vector.extract_strided_slice %3 {offsets = [0, 0], sizes = [4, 1], strides = [1, 1]} : vector<4x2xf32> to vector<4x1xf32>
    %cst = arith.constant 0.001953125 : f32
    %5 = vector.broadcast %cst : f32 to vector<4x1xf32>
    %6 = arith.mulf %4, %5 : vector<4x1xf32>
    %7 = vector.extract_strided_slice %3 {offsets = [0, 1], sizes = [4, 1], strides = [1, 1]} : vector<4x2xf32> to vector<4x1xf32>
    %cst_6 = arith.constant 0.001953125 : f32
    %8 = vector.broadcast %cst_6 : f32 to vector<4x1xf32>
    %9 = arith.mulf %7, %8 : vector<4x1xf32>
    %10 = arith.mulf %6, %6 : vector<4x1xf32>
    %11 = arith.subf %9, %10 : vector<4x1xf32>
    %12 = vector.broadcast %6 : vector<4x1xf32> to vector<4x512xf32>
    %13 = arith.subf %0, %12 : vector<4x512xf32>
    %cst_7 = arith.constant 9.99999974E-6 : f32
    %14 = vector.broadcast %cst_7 : f32 to vector<4x1xf32>
    %15 = arith.addf %11, %14 : vector<4x1xf32>
    %16 = math.rsqrt %15 : vector<4x1xf32>
    %17 = vector.broadcast %16 : vector<4x1xf32> to vector<4x512xf32>
    %18 = arith.mulf %13, %17 : vector<4x512xf32>
    %19 = vector.extract_strided_slice %1 {offsets = [0, 0], sizes = [4, 1], strides = [1, 1]} : vector<4x2xf32> to vector<4x1xf32>
    %20 = vector.broadcast %19 : vector<4x1xf32> to vector<4x512xf32>
    %21 = arith.mulf %18, %20 : vector<4x512xf32>
    %22 = vector.extract_strided_slice %1 {offsets = [0, 1], sizes = [4, 1], strides = [1, 1]} : vector<4x2xf32> to vector<4x1xf32>
    %23 = vector.broadcast %22 : vector<4x1xf32> to vector<4x512xf32>
    %24 = arith.addf %21, %23 : vector<4x512xf32>
    %c0_8 = arith.constant 0 : index
    %c0_9 = arith.constant 0 : index
    %25 = vector.load %arg4[%c0_8, %c0_9] : memref<4x512xf32, #tpu.memory_space<vmem>>, vector<4x512xf32>
    %26 = arith.addf %24, %25 : vector<4x512xf32>
    %cst_10 = arith.constant 0.000000e+00 : f32
    %27 = vector.broadcast %cst_10 : f32 to vector<4x512xf32>
    %28 = arith.maximumf %26, %27 : vector<4x512xf32>
    %c0_11 = arith.constant 0 : index
    %c0_12 = arith.constant 0 : index
    %29 = vector.load %arg5[%c0_11, %c0_12] : memref<4x512xf32, #tpu.memory_space<vmem>>, vector<4x512xf32>
    tpu.vector_store %arg5[%c0_11, %c0_12], %28 {strides = array<i32>} : memref<4x512xf32, #tpu.memory_space<vmem>>, vector<4x512xf32>,
    return
  }
  func.func @transform_0(%arg0: i32) -> (i32, i32) {
    %c0_i32 = arith.constant 0 : i32
    %c0_i32_0 = arith.constant 0 : i32
    return %c0_i32, %arg0 : i32, i32
  }
  func.func @transform_1(%arg0: i32) -> (i32, i32, i32) {
    %c0_i32 = arith.constant 0 : i32
    %c0_i32_0 = arith.constant 0 : i32
    %c0_i32_1 = arith.constant 0 : i32
    %c0_i32_2 = arith.constant 0 : i32
    return %c0_i32, %c0_i32_0, %c0_i32_1 : i32, i32, i32
  }
  func.func @transform_2(%arg0: i32) -> (i32, i32) {
    %c0_i32 = arith.constant 0 : i32
    %c0_i32_0 = arith.constant 0 : i32
    %c0_i32_1 = arith.constant 0 : i32
    return %c0_i32, %c0_i32_0 : i32, i32
  }
  func.func @transform_3(%arg0: i32) -> (i32, i32) {
    %c0_i32 = arith.constant 0 : i32
    %c0_i32_0 = arith.constant 0 : i32
    return %c0_i32, %arg0 : i32, i32
  }
  func.func @transform_4(%arg0: i32) -> (i32, i32) {
    %c0_i32 = arith.constant 0 : i32
    %c0_i32_0 = arith.constant 0 : i32
    return %c0_i32, %arg0 : i32, i32
  }
}

module attributes {stable_mosaic.version = 11 : i64} {
  func.func @_bn_conv1x1_stats_kernel(%arg0: i32, %arg1: i32, %arg2: memref<4x512xf32, #tpu.memory_space<vmem>>, %arg3: memref<1x4x2xf32, #tpu.memory_space<vmem>>, %arg4: memref<4x2xf32, #tpu.memory_space<vmem>>, %arg5: memref<4x4xf32, #tpu.memory_space<vmem>>, %arg6: memref<4x512xf32, #tpu.memory_space<vmem>>, %arg7: memref<1x4x2xf32, #tpu.memory_space<vmem>>) attributes {dimension_semantics = [#tpu.dimension_semantics<parallel>, #tpu.dimension_semantics<arbitrary>], iteration_bounds = array<i64: 1, 1>, scalar_prefetch = 0 : i64, scratch_operands = 0 : i64, tpu.core_type = #tpu.core_type<tc>, window_params = [{transform_indices = @transform_0, window_bounds = array<i64: 4, 512>}, {pipeline_mode = #tpu.pipeline_mode<synchronous>, transform_indices = @transform_1, window_bounds = array<i64: 1, 4, 2>}, {pipeline_mode = #tpu.pipeline_mode<synchronous>, transform_indices = @transform_2, window_bounds = array<i64: 4, 2>}, {pipeline_mode = #tpu.pipeline_mode<synchronous>, transform_indices = @transform_3, window_bounds = array<i64: 4, 4>}, {transform_indices = @transform_4, window_bounds = array<i64: 4, 512>}, {transform_indices = @transform_5, window_bounds = array<i64: 1, 4, 2>}]} {
    %c0 = arith.constant 0 : index
    %c0_0 = arith.constant 0 : index
    %0 = vector.load %arg2[%c0, %c0_0] : memref<4x512xf32, #tpu.memory_space<vmem>>, vector<4x512xf32>
    %c0_1 = arith.constant 0 : index
    %c0_2 = arith.constant 0 : index
    %1 = vector.load %arg4[%c0_1, %c0_2] : memref<4x2xf32, #tpu.memory_space<vmem>>, vector<4x2xf32>
    %c0_3 = arith.constant 0 : index
    %c0_4 = arith.constant 0 : index
    %c0_5 = arith.constant 0 : index
    %2 = vector.load %arg3[%c0_3, %c0_4, %c0_5] : memref<1x4x2xf32, #tpu.memory_space<vmem>>, vector<1x4x2xf32>
    %3 = vector.shape_cast %2 : vector<1x4x2xf32> to vector<4x2xf32>
    %4 = vector.extract_strided_slice %3 {offsets = [0, 0], sizes = [4, 1], strides = [1, 1]} : vector<4x2xf32> to vector<4x1xf32>
    %cst = arith.constant 0.001953125 : f32
    %5 = vector.broadcast %cst : f32 to vector<4x1xf32>
    %6 = arith.mulf %4, %5 : vector<4x1xf32>
    %7 = vector.extract_strided_slice %3 {offsets = [0, 1], sizes = [4, 1], strides = [1, 1]} : vector<4x2xf32> to vector<4x1xf32>
    %cst_6 = arith.constant 0.001953125 : f32
    %8 = vector.broadcast %cst_6 : f32 to vector<4x1xf32>
    %9 = arith.mulf %7, %8 : vector<4x1xf32>
    %10 = arith.mulf %6, %6 : vector<4x1xf32>
    %11 = arith.subf %9, %10 : vector<4x1xf32>
    %12 = vector.broadcast %6 : vector<4x1xf32> to vector<4x512xf32>
    %13 = arith.subf %0, %12 : vector<4x512xf32>
    %cst_7 = arith.constant 9.99999974E-6 : f32
    %14 = vector.broadcast %cst_7 : f32 to vector<4x1xf32>
    %15 = arith.addf %11, %14 : vector<4x1xf32>
    %16 = math.rsqrt %15 : vector<4x1xf32>
    %17 = vector.broadcast %16 : vector<4x1xf32> to vector<4x512xf32>
    %18 = arith.mulf %13, %17 : vector<4x512xf32>
    %19 = vector.extract_strided_slice %1 {offsets = [0, 0], sizes = [4, 1], strides = [1, 1]} : vector<4x2xf32> to vector<4x1xf32>
    %20 = vector.broadcast %19 : vector<4x1xf32> to vector<4x512xf32>
    %21 = arith.mulf %18, %20 : vector<4x512xf32>
    %22 = vector.extract_strided_slice %1 {offsets = [0, 1], sizes = [4, 1], strides = [1, 1]} : vector<4x2xf32> to vector<4x1xf32>
    %23 = vector.broadcast %22 : vector<4x1xf32> to vector<4x512xf32>
    %24 = arith.addf %21, %23 : vector<4x512xf32>
    %cst_8 = arith.constant 0.000000e+00 : f32
    %25 = vector.broadcast %cst_8 : f32 to vector<4x512xf32>
    %26 = arith.maximumf %24, %25 : vector<4x512xf32>
    %c0_9 = arith.constant 0 : index
    %c0_10 = arith.constant 0 : index
    %27 = vector.load %arg5[%c0_9, %c0_10] : memref<4x4xf32, #tpu.memory_space<vmem>>, vector<4x4xf32>
    %cst_11 = arith.constant dense<0.000000e+00> : vector<4x512xf32>
    %28 = tpu.matmul %27, %26, %cst_11 {dimension_numbers = #tpu.dot_dimension_numbers<[1], [0], [0], [1], [0, 0, 1, 1], [], []>} : vector<4x4xf32>, vector<4x512xf32>, vector<4x512xf32> -> vector<4x512xf32>
    %c0_12 = arith.constant 0 : index
    %c0_13 = arith.constant 0 : index
    %29 = vector.load %arg6[%c0_12, %c0_13] : memref<4x512xf32, #tpu.memory_space<vmem>>, vector<4x512xf32>
    tpu.vector_store %arg6[%c0_12, %c0_13], %28 {strides = array<i32>} : memref<4x512xf32, #tpu.memory_space<vmem>>, vector<4x512xf32>,
    %cst_14 = arith.constant dense<0.000000e+00> : vector<4xf32>
    %30 = vector.multi_reduction <add>, %28, %cst_14 [1] : vector<4x512xf32> to vector<4xf32>
    %31 = vector.shape_cast %30 : vector<4xf32> to vector<4x1xf32>
    %32 = arith.mulf %28, %28 : vector<4x512xf32>
    %cst_15 = arith.constant dense<0.000000e+00> : vector<4xf32>
    %33 = vector.multi_reduction <add>, %32, %cst_15 [1] : vector<4x512xf32> to vector<4xf32>
    %34 = vector.shape_cast %33 : vector<4xf32> to vector<4x1xf32>
    %35 = tpu.concatenate %31, %34 in 1 : vector<4x1xf32>, vector<4x1xf32> -> vector<4x2xf32>
    %c0_i32 = arith.constant 0 : i32
    %36 = arith.cmpi eq, %arg1, %c0_i32 : i32
    %37 = arith.extui %36 : i1 to i32
    %c0_i32_16 = arith.constant 0 : i32
    %38 = arith.cmpi ne, %37, %c0_i32_16 : i32
    scf.if %38 {
      %cst_23 = arith.constant 0.000000e+00 : f32
      %45 = vector.broadcast %cst_23 : f32 to vector<4x2xf32>
      %c0_24 = arith.constant 0 : index
      %c0_25 = arith.constant 0 : index
      %c0_26 = arith.constant 0 : index
      %46 = vector.load %arg7[%c0_24, %c0_25, %c0_26] : memref<1x4x2xf32, #tpu.memory_space<vmem>>, vector<1x4x2xf32>
      %47 = vector.shape_cast %46 : vector<1x4x2xf32> to vector<4x2xf32>
      %48 = vector.shape_cast %45 : vector<4x2xf32> to vector<1x4x2xf32>
      tpu.vector_store %arg7[%c0_24, %c0_25, %c0_26], %48 {strides = array<i32>} : memref<1x4x2xf32, #tpu.memory_space<vmem>>, vector<1x4x2xf32>,
    } else {
    }
    %c0_17 = arith.constant 0 : index
    %c0_18 = arith.constant 0 : index
    %c0_19 = arith.constant 0 : index
    %39 = vector.load %arg7[%c0_17, %c0_18, %c0_19] : memref<1x4x2xf32, #tpu.memory_space<vmem>>, vector<1x4x2xf32>
    %40 = vector.shape_cast %39 : vector<1x4x2xf32> to vector<4x2xf32>
    %41 = arith.addf %40, %35 : vector<4x2xf32>
    %c0_20 = arith.constant 0 : index
    %c0_21 = arith.constant 0 : index
    %c0_22 = arith.constant 0 : index
    %42 = vector.load %arg7[%c0_20, %c0_21, %c0_22] : memref<1x4x2xf32, #tpu.memory_space<vmem>>, vector<1x4x2xf32>
    %43 = vector.shape_cast %42 : vector<1x4x2xf32> to vector<4x2xf32>
    %44 = vector.shape_cast %41 : vector<4x2xf32> to vector<1x4x2xf32>
    tpu.vector_store %arg7[%c0_20, %c0_21, %c0_22], %44 {strides = array<i32>} : memref<1x4x2xf32, #tpu.memory_space<vmem>>, vector<1x4x2xf32>,
    return
  }
  func.func @transform_0(%arg0: i32, %arg1: i32) -> (i32, i32) {
    %c1_i32 = arith.constant 1 : i32
    %0 = arith.muli %arg0, %c1_i32 : i32
    %1 = arith.addi %0, %arg1 : i32
    %c0_i32 = arith.constant 0 : i32
    %c0_i32_0 = arith.constant 0 : i32
    return %c0_i32, %1 : i32, i32
  }
  func.func @transform_1(%arg0: i32, %arg1: i32) -> (i32, i32, i32) {
    %c0_i32 = arith.constant 0 : i32
    %c0_i32_0 = arith.constant 0 : i32
    %c0_i32_1 = arith.constant 0 : i32
    %c0_i32_2 = arith.constant 0 : i32
    return %c0_i32, %c0_i32_0, %c0_i32_1 : i32, i32, i32
  }
  func.func @transform_2(%arg0: i32, %arg1: i32) -> (i32, i32) {
    %c0_i32 = arith.constant 0 : i32
    %c0_i32_0 = arith.constant 0 : i32
    %c0_i32_1 = arith.constant 0 : i32
    return %c0_i32, %c0_i32_0 : i32, i32
  }
  func.func @transform_3(%arg0: i32, %arg1: i32) -> (i32, i32) {
    %c0_i32 = arith.constant 0 : i32
    %c0_i32_0 = arith.constant 0 : i32
    %c0_i32_1 = arith.constant 0 : i32
    return %c0_i32, %c0_i32_0 : i32, i32
  }
  func.func @transform_4(%arg0: i32, %arg1: i32) -> (i32, i32) {
    %c1_i32 = arith.constant 1 : i32
    %0 = arith.muli %arg0, %c1_i32 : i32
    %1 = arith.addi %0, %arg1 : i32
    %c0_i32 = arith.constant 0 : i32
    %c0_i32_0 = arith.constant 0 : i32
    return %c0_i32, %1 : i32, i32
  }
  func.func @transform_5(%arg0: i32, %arg1: i32) -> (i32, i32, i32) {
    %c0_i32 = arith.constant 0 : i32
    %c0_i32_0 = arith.constant 0 : i32
    %c0_i32_1 = arith.constant 0 : i32
    return %arg0, %c0_i32, %c0_i32_0 : i32, i32, i32
  }
}

module attributes {stable_mosaic.version = 11 : i64} {
  func.func @_bn_conv3x3_stats_kernel(%arg0: i32, %arg1: i32, %arg2: memref<4x512xf32, #tpu.memory_space<vmem>>, %arg3: memref<1x4x2xf32, #tpu.memory_space<vmem>>, %arg4: memref<4x2xf32, #tpu.memory_space<vmem>>, %arg5: memref<9x4x4xf32, #tpu.memory_space<vmem>>, %arg6: memref<9x512xf32, #tpu.memory_space<vmem>>, %arg7: memref<4x512xf32, #tpu.memory_space<vmem>>, %arg8: memref<1x4x2xf32, #tpu.memory_space<vmem>>) attributes {dimension_semantics = [#tpu.dimension_semantics<parallel>, #tpu.dimension_semantics<arbitrary>], iteration_bounds = array<i64: 1, 1>, scalar_prefetch = 0 : i64, scratch_operands = 0 : i64, tpu.core_type = #tpu.core_type<tc>, window_params = [{transform_indices = @transform_0, window_bounds = array<i64: 4, 512>}, {pipeline_mode = #tpu.pipeline_mode<synchronous>, transform_indices = @transform_1, window_bounds = array<i64: 1, 4, 2>}, {pipeline_mode = #tpu.pipeline_mode<synchronous>, transform_indices = @transform_2, window_bounds = array<i64: 4, 2>}, {pipeline_mode = #tpu.pipeline_mode<synchronous>, transform_indices = @transform_3, window_bounds = array<i64: 9, 4, 4>}, {pipeline_mode = #tpu.pipeline_mode<synchronous>, transform_indices = @transform_4, window_bounds = array<i64: 9, 512>}, {transform_indices = @transform_5, window_bounds = array<i64: 4, 512>}, {transform_indices = @transform_6, window_bounds = array<i64: 1, 4, 2>}]} {
    %c0 = arith.constant 0 : index
    %c0_0 = arith.constant 0 : index
    %0 = vector.load %arg2[%c0, %c0_0] : memref<4x512xf32, #tpu.memory_space<vmem>>, vector<4x512xf32>
    %c0_1 = arith.constant 0 : index
    %c0_2 = arith.constant 0 : index
    %1 = vector.load %arg4[%c0_1, %c0_2] : memref<4x2xf32, #tpu.memory_space<vmem>>, vector<4x2xf32>
    %c0_3 = arith.constant 0 : index
    %c0_4 = arith.constant 0 : index
    %c0_5 = arith.constant 0 : index
    %2 = vector.load %arg3[%c0_3, %c0_4, %c0_5] : memref<1x4x2xf32, #tpu.memory_space<vmem>>, vector<1x4x2xf32>
    %3 = vector.shape_cast %2 : vector<1x4x2xf32> to vector<4x2xf32>
    %4 = vector.extract_strided_slice %3 {offsets = [0, 0], sizes = [4, 1], strides = [1, 1]} : vector<4x2xf32> to vector<4x1xf32>
    %cst = arith.constant 0.001953125 : f32
    %5 = vector.broadcast %cst : f32 to vector<4x1xf32>
    %6 = arith.mulf %4, %5 : vector<4x1xf32>
    %7 = vector.extract_strided_slice %3 {offsets = [0, 1], sizes = [4, 1], strides = [1, 1]} : vector<4x2xf32> to vector<4x1xf32>
    %cst_6 = arith.constant 0.001953125 : f32
    %8 = vector.broadcast %cst_6 : f32 to vector<4x1xf32>
    %9 = arith.mulf %7, %8 : vector<4x1xf32>
    %10 = arith.mulf %6, %6 : vector<4x1xf32>
    %11 = arith.subf %9, %10 : vector<4x1xf32>
    %12 = vector.broadcast %6 : vector<4x1xf32> to vector<4x512xf32>
    %13 = arith.subf %0, %12 : vector<4x512xf32>
    %cst_7 = arith.constant 9.99999974E-6 : f32
    %14 = vector.broadcast %cst_7 : f32 to vector<4x1xf32>
    %15 = arith.addf %11, %14 : vector<4x1xf32>
    %16 = math.rsqrt %15 : vector<4x1xf32>
    %17 = vector.broadcast %16 : vector<4x1xf32> to vector<4x512xf32>
    %18 = arith.mulf %13, %17 : vector<4x512xf32>
    %19 = vector.extract_strided_slice %1 {offsets = [0, 0], sizes = [4, 1], strides = [1, 1]} : vector<4x2xf32> to vector<4x1xf32>
    %20 = vector.broadcast %19 : vector<4x1xf32> to vector<4x512xf32>
    %21 = arith.mulf %18, %20 : vector<4x512xf32>
    %22 = vector.extract_strided_slice %1 {offsets = [0, 1], sizes = [4, 1], strides = [1, 1]} : vector<4x2xf32> to vector<4x1xf32>
    %23 = vector.broadcast %22 : vector<4x1xf32> to vector<4x512xf32>
    %24 = arith.addf %21, %23 : vector<4x512xf32>
    %cst_8 = arith.constant 0.000000e+00 : f32
    %25 = vector.broadcast %cst_8 : f32 to vector<4x512xf32>
    %26 = arith.maximumf %24, %25 : vector<4x512xf32>
    %cst_9 = arith.constant 0.000000e+00 : f32
    %27 = vector.broadcast %cst_9 : f32 to vector<4x512xf32>
    %c17_i32 = arith.constant 17 : i32
    %28 = tpu.dynamic_rotate %26 by %c17_i32 dim 1 : vector<4x512xf32>, i32 -> vector<4x512xf32>
    %c0_10 = arith.constant 0 : index
    %c0_11 = arith.constant 0 : index
    %29 = vector.load %arg6[%c0_10, %c0_11] : memref<9x512xf32, #tpu.memory_space<vmem>>, vector<1x512xf32>
    %30 = vector.broadcast %29 : vector<1x512xf32> to vector<4x512xf32>
    %31 = arith.mulf %28, %30 : vector<4x512xf32>
    %c0_12 = arith.constant 0 : index
    %c0_13 = arith.constant 0 : index
    %c0_14 = arith.constant 0 : index
    %32 = vector.load %arg5[%c0_12, %c0_13, %c0_14] : memref<9x4x4xf32, #tpu.memory_space<vmem>>, vector<1x4x4xf32>
    %33 = vector.shape_cast %32 : vector<1x4x4xf32> to vector<4x4xf32>
    %cst_15 = arith.constant dense<0.000000e+00> : vector<4x512xf32>
    %34 = tpu.matmul %33, %31, %cst_15 {dimension_numbers = #tpu.dot_dimension_numbers<[1], [0], [0], [1], [0, 0, 1, 1], [], []>} : vector<4x4xf32>, vector<4x512xf32>, vector<4x512xf32> -> vector<4x512xf32>
    %35 = arith.addf %27, %34 : vector<4x512xf32>
    %c16_i32 = arith.constant 16 : i32
    %36 = tpu.dynamic_rotate %26 by %c16_i32 dim 1 : vector<4x512xf32>, i32 -> vector<4x512xf32>
    %c1 = arith.constant 1 : index
    %c0_16 = arith.constant 0 : index
    %37 = vector.load %arg6[%c1, %c0_16] : memref<9x512xf32, #tpu.memory_space<vmem>>, vector<1x512xf32>
    %38 = vector.broadcast %37 : vector<1x512xf32> to vector<4x512xf32>
    %39 = arith.mulf %36, %38 : vector<4x512xf32>
    %c1_17 = arith.constant 1 : index
    %c0_18 = arith.constant 0 : index
    %c0_19 = arith.constant 0 : index
    %40 = vector.load %arg5[%c1_17, %c0_18, %c0_19] : memref<9x4x4xf32, #tpu.memory_space<vmem>>, vector<1x4x4xf32>
    %41 = vector.shape_cast %40 : vector<1x4x4xf32> to vector<4x4xf32>
    %cst_20 = arith.constant dense<0.000000e+00> : vector<4x512xf32>
    %42 = tpu.matmul %41, %39, %cst_20 {dimension_numbers = #tpu.dot_dimension_numbers<[1], [0], [0], [1], [0, 0, 1, 1], [], []>} : vector<4x4xf32>, vector<4x512xf32>, vector<4x512xf32> -> vector<4x512xf32>
    %43 = arith.addf %35, %42 : vector<4x512xf32>
    %c15_i32 = arith.constant 15 : i32
    %44 = tpu.dynamic_rotate %26 by %c15_i32 dim 1 : vector<4x512xf32>, i32 -> vector<4x512xf32>
    %c2 = arith.constant 2 : index
    %c0_21 = arith.constant 0 : index
    %45 = vector.load %arg6[%c2, %c0_21] : memref<9x512xf32, #tpu.memory_space<vmem>>, vector<1x512xf32>
    %46 = vector.broadcast %45 : vector<1x512xf32> to vector<4x512xf32>
    %47 = arith.mulf %44, %46 : vector<4x512xf32>
    %c2_22 = arith.constant 2 : index
    %c0_23 = arith.constant 0 : index
    %c0_24 = arith.constant 0 : index
    %48 = vector.load %arg5[%c2_22, %c0_23, %c0_24] : memref<9x4x4xf32, #tpu.memory_space<vmem>>, vector<1x4x4xf32>
    %49 = vector.shape_cast %48 : vector<1x4x4xf32> to vector<4x4xf32>
    %cst_25 = arith.constant dense<0.000000e+00> : vector<4x512xf32>
    %50 = tpu.matmul %49, %47, %cst_25 {dimension_numbers = #tpu.dot_dimension_numbers<[1], [0], [0], [1], [0, 0, 1, 1], [], []>} : vector<4x4xf32>, vector<4x512xf32>, vector<4x512xf32> -> vector<4x512xf32>
    %51 = arith.addf %43, %50 : vector<4x512xf32>
    %c1_i32 = arith.constant 1 : i32
    %52 = tpu.dynamic_rotate %26 by %c1_i32 dim 1 : vector<4x512xf32>, i32 -> vector<4x512xf32>
    %c3 = arith.constant 3 : index
    %c0_26 = arith.constant 0 : index
    %53 = vector.load %arg6[%c3, %c0_26] : memref<9x512xf32, #tpu.memory_space<vmem>>, vector<1x512xf32>
    %54 = vector.broadcast %53 : vector<1x512xf32> to vector<4x512xf32>
    %55 = arith.mulf %52, %54 : vector<4x512xf32>
    %c3_27 = arith.constant 3 : index
    %c0_28 = arith.constant 0 : index
    %c0_29 = arith.constant 0 : index
    %56 = vector.load %arg5[%c3_27, %c0_28, %c0_29] : memref<9x4x4xf32, #tpu.memory_space<vmem>>, vector<1x4x4xf32>
    %57 = vector.shape_cast %56 : vector<1x4x4xf32> to vector<4x4xf32>
    %cst_30 = arith.constant dense<0.000000e+00> : vector<4x512xf32>
    %58 = tpu.matmul %57, %55, %cst_30 {dimension_numbers = #tpu.dot_dimension_numbers<[1], [0], [0], [1], [0, 0, 1, 1], [], []>} : vector<4x4xf32>, vector<4x512xf32>, vector<4x512xf32> -> vector<4x512xf32>
    %59 = arith.addf %51, %58 : vector<4x512xf32>
    %c4 = arith.constant 4 : index
    %c0_31 = arith.constant 0 : index
    %60 = vector.load %arg6[%c4, %c0_31] : memref<9x512xf32, #tpu.memory_space<vmem>>, vector<1x512xf32>
    %61 = vector.broadcast %60 : vector<1x512xf32> to vector<4x512xf32>
    %62 = arith.mulf %26, %61 : vector<4x512xf32>
    %c4_32 = arith.constant 4 : index
    %c0_33 = arith.constant 0 : index
    %c0_34 = arith.constant 0 : index
    %63 = vector.load %arg5[%c4_32, %c0_33, %c0_34] : memref<9x4x4xf32, #tpu.memory_space<vmem>>, vector<1x4x4xf32>
    %64 = vector.shape_cast %63 : vector<1x4x4xf32> to vector<4x4xf32>
    %cst_35 = arith.constant dense<0.000000e+00> : vector<4x512xf32>
    %65 = tpu.matmul %64, %62, %cst_35 {dimension_numbers = #tpu.dot_dimension_numbers<[1], [0], [0], [1], [0, 0, 1, 1], [], []>} : vector<4x4xf32>, vector<4x512xf32>, vector<4x512xf32> -> vector<4x512xf32>
    %66 = arith.addf %59, %65 : vector<4x512xf32>
    %c511_i32 = arith.constant 511 : i32
    %67 = tpu.dynamic_rotate %26 by %c511_i32 dim 1 : vector<4x512xf32>, i32 -> vector<4x512xf32>
    %c5 = arith.constant 5 : index
    %c0_36 = arith.constant 0 : index
    %68 = vector.load %arg6[%c5, %c0_36] : memref<9x512xf32, #tpu.memory_space<vmem>>, vector<1x512xf32>
    %69 = vector.broadcast %68 : vector<1x512xf32> to vector<4x512xf32>
    %70 = arith.mulf %67, %69 : vector<4x512xf32>
    %c5_37 = arith.constant 5 : index
    %c0_38 = arith.constant 0 : index
    %c0_39 = arith.constant 0 : index
    %71 = vector.load %arg5[%c5_37, %c0_38, %c0_39] : memref<9x4x4xf32, #tpu.memory_space<vmem>>, vector<1x4x4xf32>
    %72 = vector.shape_cast %71 : vector<1x4x4xf32> to vector<4x4xf32>
    %cst_40 = arith.constant dense<0.000000e+00> : vector<4x512xf32>
    %73 = tpu.matmul %72, %70, %cst_40 {dimension_numbers = #tpu.dot_dimension_numbers<[1], [0], [0], [1], [0, 0, 1, 1], [], []>} : vector<4x4xf32>, vector<4x512xf32>, vector<4x512xf32> -> vector<4x512xf32>
    %74 = arith.addf %66, %73 : vector<4x512xf32>
    %c497_i32 = arith.constant 497 : i32
    %75 = tpu.dynamic_rotate %26 by %c497_i32 dim 1 : vector<4x512xf32>, i32 -> vector<4x512xf32>
    %c6 = arith.constant 6 : index
    %c0_41 = arith.constant 0 : index
    %76 = vector.load %arg6[%c6, %c0_41] : memref<9x512xf32, #tpu.memory_space<vmem>>, vector<1x512xf32>
    %77 = vector.broadcast %76 : vector<1x512xf32> to vector<4x512xf32>
    %78 = arith.mulf %75, %77 : vector<4x512xf32>
    %c6_42 = arith.constant 6 : index
    %c0_43 = arith.constant 0 : index
    %c0_44 = arith.constant 0 : index
    %79 = vector.load %arg5[%c6_42, %c0_43, %c0_44] : memref<9x4x4xf32, #tpu.memory_space<vmem>>, vector<1x4x4xf32>
    %80 = vector.shape_cast %79 : vector<1x4x4xf32> to vector<4x4xf32>
    %cst_45 = arith.constant dense<0.000000e+00> : vector<4x512xf32>
    %81 = tpu.matmul %80, %78, %cst_45 {dimension_numbers = #tpu.dot_dimension_numbers<[1], [0], [0], [1], [0, 0, 1, 1], [], []>} : vector<4x4xf32>, vector<4x512xf32>, vector<4x512xf32> -> vector<4x512xf32>
    %82 = arith.addf %74, %81 : vector<4x512xf32>
    %c496_i32 = arith.constant 496 : i32
    %83 = tpu.dynamic_rotate %26 by %c496_i32 dim 1 : vector<4x512xf32>, i32 -> vector<4x512xf32>
    %c7 = arith.constant 7 : index
    %c0_46 = arith.constant 0 : index
    %84 = vector.load %arg6[%c7, %c0_46] : memref<9x512xf32, #tpu.memory_space<vmem>>, vector<1x512xf32>
    %85 = vector.broadcast %84 : vector<1x512xf32> to vector<4x512xf32>
    %86 = arith.mulf %83, %85 : vector<4x512xf32>
    %c7_47 = arith.constant 7 : index
    %c0_48 = arith.constant 0 : index
    %c0_49 = arith.constant 0 : index
    %87 = vector.load %arg5[%c7_47, %c0_48, %c0_49] : memref<9x4x4xf32, #tpu.memory_space<vmem>>, vector<1x4x4xf32>
    %88 = vector.shape_cast %87 : vector<1x4x4xf32> to vector<4x4xf32>
    %cst_50 = arith.constant dense<0.000000e+00> : vector<4x512xf32>
    %89 = tpu.matmul %88, %86, %cst_50 {dimension_numbers = #tpu.dot_dimension_numbers<[1], [0], [0], [1], [0, 0, 1, 1], [], []>} : vector<4x4xf32>, vector<4x512xf32>, vector<4x512xf32> -> vector<4x512xf32>
    %90 = arith.addf %82, %89 : vector<4x512xf32>
    %c495_i32 = arith.constant 495 : i32
    %91 = tpu.dynamic_rotate %26 by %c495_i32 dim 1 : vector<4x512xf32>, i32 -> vector<4x512xf32>
    %c8 = arith.constant 8 : index
    %c0_51 = arith.constant 0 : index
    %92 = vector.load %arg6[%c8, %c0_51] : memref<9x512xf32, #tpu.memory_space<vmem>>, vector<1x512xf32>
    %93 = vector.broadcast %92 : vector<1x512xf32> to vector<4x512xf32>
    %94 = arith.mulf %91, %93 : vector<4x512xf32>
    %c8_52 = arith.constant 8 : index
    %c0_53 = arith.constant 0 : index
    %c0_54 = arith.constant 0 : index
    %95 = vector.load %arg5[%c8_52, %c0_53, %c0_54] : memref<9x4x4xf32, #tpu.memory_space<vmem>>, vector<1x4x4xf32>
    %96 = vector.shape_cast %95 : vector<1x4x4xf32> to vector<4x4xf32>
    %cst_55 = arith.constant dense<0.000000e+00> : vector<4x512xf32>
    %97 = tpu.matmul %96, %94, %cst_55 {dimension_numbers = #tpu.dot_dimension_numbers<[1], [0], [0], [1], [0, 0, 1, 1], [], []>} : vector<4x4xf32>, vector<4x512xf32>, vector<4x512xf32> -> vector<4x512xf32>
    %98 = arith.addf %90, %97 : vector<4x512xf32>
    %c0_56 = arith.constant 0 : index
    %c0_57 = arith.constant 0 : index
    %99 = vector.load %arg7[%c0_56, %c0_57] : memref<4x512xf32, #tpu.memory_space<vmem>>, vector<4x512xf32>
    tpu.vector_store %arg7[%c0_56, %c0_57], %98 {strides = array<i32>} : memref<4x512xf32, #tpu.memory_space<vmem>>, vector<4x512xf32>,
    %cst_58 = arith.constant dense<0.000000e+00> : vector<4xf32>
    %100 = vector.multi_reduction <add>, %98, %cst_58 [1] : vector<4x512xf32> to vector<4xf32>
    %101 = vector.shape_cast %100 : vector<4xf32> to vector<4x1xf32>
    %102 = arith.mulf %98, %98 : vector<4x512xf32>
    %cst_59 = arith.constant dense<0.000000e+00> : vector<4xf32>
    %103 = vector.multi_reduction <add>, %102, %cst_59 [1] : vector<4x512xf32> to vector<4xf32>
    %104 = vector.shape_cast %103 : vector<4xf32> to vector<4x1xf32>
    %105 = tpu.concatenate %101, %104 in 1 : vector<4x1xf32>, vector<4x1xf32> -> vector<4x2xf32>
    %c0_i32 = arith.constant 0 : i32
    %106 = arith.cmpi eq, %arg1, %c0_i32 : i32
    %107 = arith.extui %106 : i1 to i32
    %c0_i32_60 = arith.constant 0 : i32
    %108 = arith.cmpi ne, %107, %c0_i32_60 : i32
    scf.if %108 {
      %cst_67 = arith.constant 0.000000e+00 : f32
      %115 = vector.broadcast %cst_67 : f32 to vector<4x2xf32>
      %c0_68 = arith.constant 0 : index
      %c0_69 = arith.constant 0 : index
      %c0_70 = arith.constant 0 : index
      %116 = vector.load %arg8[%c0_68, %c0_69, %c0_70] : memref<1x4x2xf32, #tpu.memory_space<vmem>>, vector<1x4x2xf32>
      %117 = vector.shape_cast %116 : vector<1x4x2xf32> to vector<4x2xf32>
      %118 = vector.shape_cast %115 : vector<4x2xf32> to vector<1x4x2xf32>
      tpu.vector_store %arg8[%c0_68, %c0_69, %c0_70], %118 {strides = array<i32>} : memref<1x4x2xf32, #tpu.memory_space<vmem>>, vector<1x4x2xf32>,
    } else {
    }
    %c0_61 = arith.constant 0 : index
    %c0_62 = arith.constant 0 : index
    %c0_63 = arith.constant 0 : index
    %109 = vector.load %arg8[%c0_61, %c0_62, %c0_63] : memref<1x4x2xf32, #tpu.memory_space<vmem>>, vector<1x4x2xf32>
    %110 = vector.shape_cast %109 : vector<1x4x2xf32> to vector<4x2xf32>
    %111 = arith.addf %110, %105 : vector<4x2xf32>
    %c0_64 = arith.constant 0 : index
    %c0_65 = arith.constant 0 : index
    %c0_66 = arith.constant 0 : index
    %112 = vector.load %arg8[%c0_64, %c0_65, %c0_66] : memref<1x4x2xf32, #tpu.memory_space<vmem>>, vector<1x4x2xf32>
    %113 = vector.shape_cast %112 : vector<1x4x2xf32> to vector<4x2xf32>
    %114 = vector.shape_cast %111 : vector<4x2xf32> to vector<1x4x2xf32>
    tpu.vector_store %arg8[%c0_64, %c0_65, %c0_66], %114 {strides = array<i32>} : memref<1x4x2xf32, #tpu.memory_space<vmem>>, vector<1x4x2xf32>,
    return
  }
  func.func @transform_0(%arg0: i32, %arg1: i32) -> (i32, i32) {
    %c1_i32 = arith.constant 1 : i32
    %0 = arith.muli %arg0, %c1_i32 : i32
    %1 = arith.addi %0, %arg1 : i32
    %c0_i32 = arith.constant 0 : i32
    %c0_i32_0 = arith.constant 0 : i32
    return %c0_i32, %1 : i32, i32
  }
  func.func @transform_1(%arg0: i32, %arg1: i32) -> (i32, i32, i32) {
    %c0_i32 = arith.constant 0 : i32
    %c0_i32_0 = arith.constant 0 : i32
    %c0_i32_1 = arith.constant 0 : i32
    %c0_i32_2 = arith.constant 0 : i32
    return %c0_i32, %c0_i32_0, %c0_i32_1 : i32, i32, i32
  }
  func.func @transform_2(%arg0: i32, %arg1: i32) -> (i32, i32) {
    %c0_i32 = arith.constant 0 : i32
    %c0_i32_0 = arith.constant 0 : i32
    %c0_i32_1 = arith.constant 0 : i32
    return %c0_i32, %c0_i32_0 : i32, i32
  }
  func.func @transform_3(%arg0: i32, %arg1: i32) -> (i32, i32, i32) {
    %c0_i32 = arith.constant 0 : i32
    %c0_i32_0 = arith.constant 0 : i32
    %c0_i32_1 = arith.constant 0 : i32
    %c0_i32_2 = arith.constant 0 : i32
    return %c0_i32, %c0_i32_0, %c0_i32_1 : i32, i32, i32
  }
  func.func @transform_4(%arg0: i32, %arg1: i32) -> (i32, i32) {
    %c0_i32 = arith.constant 0 : i32
    %c0_i32_0 = arith.constant 0 : i32
    %c0_i32_1 = arith.constant 0 : i32
    return %c0_i32, %c0_i32_0 : i32, i32
  }
  func.func @transform_5(%arg0: i32, %arg1: i32) -> (i32, i32) {
    %c1_i32 = arith.constant 1 : i32
    %0 = arith.muli %arg0, %c1_i32 : i32
    %1 = arith.addi %0, %arg1 : i32
    %c0_i32 = arith.constant 0 : i32
    %c0_i32_0 = arith.constant 0 : i32
    return %c0_i32, %1 : i32, i32
  }
  func.func @transform_6(%arg0: i32, %arg1: i32) -> (i32, i32, i32) {
    %c0_i32 = arith.constant 0 : i32
    %c0_i32_0 = arith.constant 0 : i32
    %c0_i32_1 = arith.constant 0 : i32
    return %arg0, %c0_i32, %c0_i32_0 : i32, i32, i32
  }
}

</mosaic_0001>

<bundles_post_ra>
// kernel: bottleneck_forward.7
= control target key start
LH: loop header
LB: loop body
LE: loop exit
PB: predicated region body
PF: predicated region fallthrough
CT: control target
= control target key end

     0   :  { %v107_v1 = vmov 0   ;;  %s108_s19 = smov 1   ;;  %v109_v5 = vmov 1   ;;  %v110_v10 = vmov 839922192   ;;  %v35_v12 = vlaneseq  ;;  %s160_s1 = inlined_call_operand.vmem [shape: f32[1,4,2], index: 1, kind: input, shape index: {}]   ;;  %s161_s2 = inlined_call_operand.vmem [shape: f32[4,2], index: 2, kind: input, shape index: {}]   ;;  %s162_s0 = inlined_call_operand.vmem [shape: f32[4,512], index: 0, kind: input, shape index: {}]   ;;  %s163_s3 = inlined_call_operand.vmem [shape: f32[4,512], index: 3, kind: input, shape index: {}]   ;;  %s164_s4 = inlined_call_operand.vmem [shape: f32[4,512], index: 4, kind: output, shape index: {}]  }
   0x1   :  { %v20_v0 = vld [vmem:[%s160_s1] sm:$0xf]  ;;  %102 = vset.pattern.permute.xlu1 %v107_v1  ;;  %101 = vset.pattern.permute.xlu0 %v107_v1  ;;  %v33_v11 = vunpack.c.l.s4 %v110_v10  ;;  %v18_v20 = vld [vmem:[%s162_s0 + $0x8] sm:$0xff] }
   0x2   :  { %v19_v2 = vld [vmem:[%s161_s2] sm:$0xf]  ;;  %v21_v3 = vmul.f32 0.001953125, %v20_v0  ;;  %v36_v14 = vshrl.u32 %v35_v12, 7  ;;  %v86_v33 = vld [vmem:[%s163_s3 + $0x8] sm:$0xff] }
   0x3   :  { %60 = vperm.xlu1 %102, %v19_v2   ;;  %v34_v13 = vunpack.c.0.s8 %v33_v11  ;;  %v17_v19 = vld [vmem:[%s162_s0] sm:$0xff] }
   0x4   :  { %v22_v4 = vmul.f32 %v21_v3, %v21_v3  ;;  %v85_v32 = vld [vmem:[%s163_s3] sm:$0xff] }
   0x5   :  { %v37_v16 = vsub.s32 %v34_v13, %v36_v14 }
   0x6   :  { %24 = vrot.lane.b32.xlu0 %v22_v4, %s108_s19 }
   0x7   :  { %103 = vset.pattern.permute.xlu1 %v109_v5 }
   0xa   :  { %30 = vperm.xlu0 %101, %v21_v3  }
   0xe   :  { %104 = vset.pattern.permute.xlu0 %v109_v5 }
  0x78   :  { %v25_v6 = vpop.permute.xlu0 %24 }
  0x79   :  { %v27_v7 = vsub.f32 %v21_v3, %v25_v6 }
  0x7b   :  { %v42_v8 = vadd.f32 1e-05, %v27_v7 }
  0x7d   :  { %105 = vrsqrt.f32 %v42_v8 }
  0x7e   :  { %v61_v17 = vpop.permute.xlu1 %60 }
  0x7f   :  { %v68_v25 = vrot.slane %v61_v17, %v37_v16 }
  0x85   :  { %v31_v15 = vpop.permute.xlu0 %30 }
  0x86   :  { %v38_v18 = vrot.slane %v31_v15, %v37_v16 }
  0x88   :  { %v40_v21 = vsub.f32 %v17_v19, %v38_v18  ;;  %v41_v22 = vsub.f32 %v18_v20, %v38_v18 }
  0x8a   :  { %v106_v9 = vpop.eup %105 }
  0x8b   :  { %46 = vperm.xlu1 %103, %v106_v9  }
  0x8f   :  { %73 = vperm.xlu1 %103, %v19_v2  }
 0x106   :  { %v47_v23 = vpop.permute.xlu1 %46 }
 0x107   :  { %v54_v24 = vrot.slane %v47_v23, %v37_v16 }
 0x109   :  { %v56_v26 = vmul.f32 %v54_v24, %v40_v21  ;;  %v57_v27 = vmul.f32 %v54_v24, %v41_v22 }
 0x10a   :  { %v74_v28 = vpop.permute.xlu1 %73 }
 0x10b   :  { %v70_v29 = vmul.f32 %v68_v25, %v56_v26  ;;  %v71_v30 = vmul.f32 %v68_v25, %v57_v27  ;;  %v81_v31 = vrot.slane %v74_v28, %v37_v16 }
 0x10d   :  { %v83_v34 = vadd.f32 %v81_v31, %v70_v29  ;;  %v84_v35 = vadd.f32 %v81_v31, %v71_v30 }
 0x10f   :  { %v87_v36 = vadd.f32 %v85_v32, %v83_v34  ;;  %v88_v37 = vadd.f32 %v86_v33, %v84_v35 }
 0x111   :  { %v89_v38 = vmax.f32 %v87_v36, 0.0  ;;  %v90_v39 = vmax.f32 %v88_v37, 0.0 }
 0x113   :  { %91 = vst [vmem:[%s164_s4] sm:$0xff] %v89_v38  ;;  %92 = vst [vmem:[%s164_s4 + $0x8] sm:$0xff] %v90_v39 }

// kernel: bottleneck_forward.4
= control target key start
LH: loop header
LB: loop body
LE: loop exit
PB: predicated region body
PF: predicated region fallthrough
CT: control target
= control target key end

     0   :  { %vm249_vm0 = vcmask 11264   ;;  %vm60_vm1 = vcmask 1043456   ;;  %v300_v1 = vmov 0.0   ;;  %vm56_vm2 = vcmask 31744   ;;  %s359_s0 = inlined_call_operand.vmem [shape: f32[4,512], index: 0, kind: input, shape index: {}]   ;;  %s360_s3 = inlined_call_operand.vmem [shape: f32[1,4,2], index: 3, kind: output, shape index: {1}]   ;;  %s361_s1 = inlined_call_operand.vmem [shape: f32[4,4], index: 1, kind: input, shape index: {}]   ;;  %s362_s2 = inlined_call_operand.vmem [shape: f32[4,512], index: 2, kind: output, shape index: {0}]  }
   0x1   :  { %v50_v0 = vld [vmem:[%s359_s0] sm:$0xff]  ;;  %133 = vmatprep.mubr.f32.mxu0 %v300_v1  ;;  %250 = vst.msk [vmem:[%s360_s3] sm:$0xf] %vm249_vm0, %v300_v1  ;;  %v51_v2 = vld [vmem:[%s359_s0 + $0x8] sm:$0xff]  ;;  %204 = vmatprep.mubr.f32.mxu1 %v300_v1  ;;  %vm243_vm3 = vcmask 7168  }
   0x2   :  { %v54_v3 = vcombine.high %v50_v0, %v50_v0  ;;  %v55_v4 = vcombine.high %v51_v2, %v51_v2  ;;  %v49_v5 = vld [vmem:[%s361_s1] sm:$0xf] }
   0x4   :  { %291 = vmatprep.subr.msk.mxu0 %vm60_vm1, %v54_v3  ;;  %294 = vmatprep.subr.msk.mxu1 %vm60_vm1, %v55_v4 }
   0x5   :  { %292 = vmatpush1.msk.msra.mxu0 %vm60_vm1, %v50_v0  ;;  %295 = vmatpush1.msk.msra.mxu1 %vm60_vm1, %v51_v2 }
   0x6   :  { %293 = vmatmul.mubr.msk.f32.vlgmr.msra.gmra.mxu0 %vm56_vm2, %v49_v5  ;;  %296 = vmatmul.mubr.msk.f32.vlgmr.msra.gmra.mxu1 %vm56_vm2, %v49_v5 }
   0x8   :  { %v251_v31 = vld [vmem:[%s360_s3] sm:$0xf] }
  0xc6   :  { %v135_v6 = vpop.f32.mrf.mxu0  ;;  %v206_v7 = vpop.f32.mrf.mxu1 }
  0xc7   :  { %v230_v8 = vmul.f32 %v135_v6, %v135_v6  ;;  %v232_v9 = vmul.f32 %v206_v7, %v206_v7  ;;  %v221_v10 = vsel %vm60_vm1, %v135_v6, 0.0  ;;  %v224_v16 = vsel %vm60_vm1, %v206_v7, 0.0 }
  0xc8   :  { %v137_v11 = vpop.f32.mrf.mxu0  ;;  %v208_v12 = vpop.f32.mrf.mxu1 }
  0xc9   :  { %v215_v13 = vcombine.low %v135_v6, %v137_v11  ;;  %v222_v14 = vsel %vm60_vm1, %v137_v11, 0.0  ;;  %v231_v15 = vmul.f32 %v137_v11, %v137_v11  ;;  %v216_v18 = vcombine.low %v206_v7, %v208_v12 }
  0xca   :  { %v223_v17 = vadd.f32 %v222_v14, %v221_v10  ;;  %v234_v19 = vsel %vm60_vm1, %v230_v8, 0.0  ;;  %v237_v21 = vsel %vm60_vm1, %v232_v9, 0.0  ;;  %v233_v24 = vmul.f32 %v208_v12, %v208_v12 }
  0xcb   :  { %219 = vst [vmem:[%s362_s2] sm:$0xff] %v215_v13  ;;  %v235_v20 = vsel %vm60_vm1, %v231_v15, 0.0  ;;  %220 = vst [vmem:[%s362_s2 + $0x8] sm:$0xff] %v216_v18  ;;  %v226_v25 = vsel %vm60_vm1, %v208_v12, 0.0 }
  0xcc   :  { %v236_v22 = vadd.f32 %v235_v20, %v234_v19  ;;  %v225_v23 = vadd.f32 %v224_v16, %v223_v17  ;;  %v239_v28 = vsel %vm60_vm1, %v233_v24, 0.0 }
  0xce   :  { %v227_v26 = vadd.f32 %v226_v25, %v225_v23  ;;  %v238_v27 = vadd.f32 %v237_v21, %v236_v22 }
  0xd0   :  { %228 = vadd.xlane.f32.xlu0 %v227_v26  ;;  %v240_v29 = vadd.f32 %v239_v28, %v238_v27 }
  0xd4   :  { %241 = vadd.xlane.f32.xlu0 %v240_v29 }
 0x159   :  { %v229_v30 = vpop.xlane.xlu0 %228 }
 0x15d   :  { %v242_v32 = vpop.xlane.xlu0 %241 }
 0x15e   :  { %v244_v33 = vsel %vm243_vm3, %v229_v30, %v242_v32 }
 0x15f   :  { %v252_v34 = vadd.f32 %v251_v31, %v244_v33 }
 0x161   :  { %254 = vst.msk [vmem:[%s360_s3] sm:$0xf] %vm249_vm0, %v252_v34 }

// kernel: bottleneck_forward.6
= control target key start
LH: loop header
LB: loop body
LE: loop exit
PB: predicated region body
PF: predicated region fallthrough
CT: control target
= control target key end

     0   :  { %v382_v1 = vmov 0   ;;  %s383_s22 = smov 1   ;;  %v384_v5 = vmov 1   ;;  %v385_v10 = vmov 0.0   ;;  %vm323_vm0 = vcmask 11264   ;;  %s461_s1 = inlined_call_operand.vmem [shape: f32[1,4,2], index: 1, kind: input, shape index: {}]   ;;  %s462_s2 = inlined_call_operand.vmem [shape: f32[4,2], index: 2, kind: input, shape index: {}]   ;;  %s463_s5 = inlined_call_operand.vmem [shape: f32[1,4,2], index: 5, kind: output, shape index: {1}]   ;;  %s464_s0 = inlined_call_operand.vmem [shape: f32[4,512], index: 0, kind: input, shape index: {}]   ;;  %s465_s3 = inlined_call_operand.vmem [shape: f32[4,4], index: 3, kind: input, shape index: {}]   ;;  %s466_s4 = inlined_call_operand.vmem [shape: f32[4,512], index: 4, kind: output, shape index: {0}]  }
   0x1   :  { %v58_v0 = vld [vmem:[%s461_s1] sm:$0xf]  ;;  %377 = vset.pattern.permute.xlu1 %v382_v1  ;;  %376 = vset.pattern.permute.xlu0 %v382_v1  ;;  %324 = vst.msk [vmem:[%s463_s5] sm:$0xf] %vm323_vm0, %v385_v10  ;;  %v386_v11 = vmov 839922192   ;;  %v73_v13 = vlaneseq }
   0x2   :  { %v57_v2 = vld [vmem:[%s462_s2] sm:$0xf]  ;;  %v59_v3 = vmul.f32 0.001953125, %v58_v0  ;;  %207 = vmatprep.mubr.f32.mxu0 %v385_v10  ;;  %278 = vmatprep.mubr.f32.mxu1 %v385_v10  ;;  %v71_v12 = vunpack.c.l.s4 %v386_v11  ;;  %v56_v21 = vld [vmem:[%s464_s0 + $0x8] sm:$0xff]  ;;  %vm134_vm1 = vcmask 1043456   ;;  %vm130_vm2 = vcmask 31744  }
   0x3   :  { %98 = vperm.xlu1 %377, %v57_v2   ;;  %v74_v15 = vshrl.u32 %v73_v13, 7  ;;  %v55_v20 = vld [vmem:[%s464_s0] sm:$0xff]  ;;  %vm317_vm3 = vcmask 7168  }
   0x4   :  { %v60_v4 = vmul.f32 %v59_v3, %v59_v3  ;;  %v72_v14 = vunpack.c.0.s8 %v71_v12  ;;  %v125_v39 = vld [vmem:[%s465_s3] sm:$0xf] }
   0x6   :  { %62 = vrot.lane.b32.xlu0 %v60_v4, %s383_s22  ;;  %v75_v17 = vsub.s32 %v72_v14, %v74_v15 }
   0x7   :  { %378 = vset.pattern.permute.xlu1 %v384_v5 }
   0x8   :  { %v325_v0 = vld [vmem:[%s463_s5] sm:$0xf] }
   0xa   :  { %68 = vperm.xlu0 %376, %v59_v3  }
   0xe   :  { %379 = vset.pattern.permute.xlu0 %v384_v5 }
  0x78   :  { %v63_v6 = vpop.permute.xlu0 %62 }
  0x79   :  { %v65_v7 = vsub.f32 %v59_v3, %v63_v6 }
  0x7b   :  { %v80_v8 = vadd.f32 1e-05, %v65_v7 }
  0x7d   :  { %380 = vrsqrt.f32 %v80_v8 }
  0x7e   :  { %v99_v18 = vpop.permute.xlu1 %98 }
  0x7f   :  { %v106_v26 = vrot.slane %v99_v18, %v75_v17 }
  0x85   :  { %v69_v16 = vpop.permute.xlu0 %68 }
  0x86   :  { %v76_v19 = vrot.slane %v69_v16, %v75_v17 }
  0x88   :  { %v78_v22 = vsub.f32 %v55_v20, %v76_v19  ;;  %v79_v23 = vsub.f32 %v56_v21, %v76_v19 }
  0x8a   :  { %v381_v9 = vpop.eup %380 }
  0x8b   :  { %84 = vperm.xlu1 %378, %v381_v9  }
  0x8f   :  { %111 = vperm.xlu1 %378, %v57_v2  }
 0x106   :  { %v85_v24 = vpop.permute.xlu1 %84 }
 0x107   :  { %v92_v25 = vrot.slane %v85_v24, %v75_v17 }
 0x109   :  { %v94_v27 = vmul.f32 %v92_v25, %v78_v22  ;;  %v95_v28 = vmul.f32 %v92_v25, %v79_v23 }
 0x10a   :  { %v112_v29 = vpop.permute.xlu1 %111 }
 0x10b   :  { %v108_v30 = vmul.f32 %v106_v26, %v94_v27  ;;  %v109_v31 = vmul.f32 %v106_v26, %v95_v28  ;;  %v119_v32 = vrot.slane %v112_v29, %v75_v17 }
 0x10d   :  { %v121_v33 = vadd.f32 %v119_v32, %v108_v30  ;;  %v122_v34 = vadd.f32 %v119_v32, %v109_v31 }
 0x10f   :  { %v123_v35 = vmax.f32 %v121_v33, 0.0  ;;  %v124_v36 = vmax.f32 %v122_v34, 0.0 }
 0x111   :  { %v128_v37 = vcombine.high %v123_v35, %v123_v35  ;;  %v129_v38 = vcombine.high %v124_v36, %v124_v36 }
 0x113   :  { %365 = vmatprep.subr.msk.mxu0 %vm134_vm1, %v128_v37  ;;  %368 = vmatprep.subr.msk.mxu1 %vm134_vm1, %v129_v38 }
 0x114   :  { %366 = vmatpush1.msk.msra.mxu0 %vm134_vm1, %v123_v35  ;;  %369 = vmatpush1.msk.msra.mxu1 %vm134_vm1, %v124_v36 }
 0x115   :  { %367 = vmatmul.mubr.msk.f32.vlgmr.msra.gmra.mxu0 %vm130_vm2, %v125_v39  ;;  %370 = vmatmul.mubr.msk.f32.vlgmr.msra.gmra.mxu1 %vm130_vm2, %v125_v39 }
 0x1d5   :  { %v209_v40 = vpop.f32.mrf.mxu0  ;;  %v280_v41 = vpop.f32.mrf.mxu1 }
 0x1d6   :  { %v304_v42 = vmul.f32 %v209_v40, %v209_v40  ;;  %v306_v43 = vmul.f32 %v280_v41, %v280_v41  ;;  %v295_v44 = vsel %vm134_vm1, %v209_v40, 0.0  ;;  %v298_v50 = vsel %vm134_vm1, %v280_v41, 0.0 }
 0x1d7   :  { %v211_v45 = vpop.f32.mrf.mxu0  ;;  %v282_v46 = vpop.f32.mrf.mxu1 }
 0x1d8   :  { %v289_v47 = vcombine.low %v209_v40, %v211_v45  ;;  %v296_v48 = vsel %vm134_vm1, %v211_v45, 0.0  ;;  %v305_v49 = vmul.f32 %v211_v45, %v211_v45  ;;  %v290_v52 = vcombine.low %v280_v41, %v282_v46 }
 0x1d9   :  { %v297_v51 = vadd.f32 %v296_v48, %v295_v44  ;;  %v308_v53 = vsel %vm134_vm1, %v304_v42, 0.0  ;;  %v307_v55 = vmul.f32 %v282_v46, %v282_v46  ;;  %v311_v56 = vsel %vm134_vm1, %v306_v43, 0.0 }
 0x1da   :  { %293 = vst [vmem:[%s466_s4] sm:$0xff] %v289_v47  ;;  %v309_v54 = vsel %vm134_vm1, %v305_v49, 0.0  ;;  %294 = vst [vmem:[%s466_s4 + $0x8] sm:$0xff] %v290_v52  ;;  %v300_v59 = vsel %vm134_vm1, %v282_v46, 0.0 }
 0x1db   :  { %v310_v57 = vadd.f32 %v309_v54, %v308_v53  ;;  %v299_v58 = vadd.f32 %v298_v50, %v297_v51  ;;  %v313_v62 = vsel %vm134_vm1, %v307_v55, 0.0 }
 0x1dd   :  { %v301_v60 = vadd.f32 %v300_v59, %v299_v58  ;;  %v312_v61 = vadd.f32 %v311_v56, %v310_v57 }
 0x1df   :  { %302 = vadd.xlane.f32.xlu0 %v301_v60  ;;  %v314_v63 = vadd.f32 %v313_v62, %v312_v61 }
 0x1e1   :  { %315 = vadd.xlane.f32.xlu1 %v314_v63 }
 0x268   :  { %v303_v1 = vpop.xlane.xlu0 %302 }
 0x26a   :  { %v316_v2 = vpop.xlane.xlu1 %315 }
 0x26b   :  { %v318_v3 = vsel %vm317_vm3, %v303_v1, %v316_v2 }
 0x26c   :  { %v326_v4 = vadd.f32 %v325_v0, %v318_v3 }
 0x26e   :  { %328 = vst.msk [vmem:[%s463_s5] sm:$0xf] %vm323_vm0, %v326_v4 }

// kernel: bottleneck_forward.5
= control target key start
LH: loop header
LB: loop body
LE: loop exit
PB: predicated region body
PF: predicated region fallthrough
CT: control target
= control target key end

     0   :  { %v2108_v1 = vmov 0   ;;  %s2109_s25 = smov 1   ;;  %v2110_v5 = vmov 1   ;;  %v2111_v10 = vmov 839922192   ;;  %v76_v12 = vlaneseq  ;;  %s2113_s30 = smov 16   ;;  %s2506_s1 = inlined_call_operand.vmem [shape: f32[1,4,2], index: 1, kind: input, shape index: {}]   ;;  %s2507_s2 = inlined_call_operand.vmem [shape: f32[4,2], index: 2, kind: input, shape index: {}]   ;;  %s2508_s0 = inlined_call_operand.vmem [shape: f32[4,512], index: 0, kind: input, shape index: {}]   ;;  %s2509_s4 = inlined_call_operand.vmem [shape: f32[9,512], index: 4, kind: input, shape index: {}]   ;;  %s2510_s3 = inlined_call_operand.vmem [shape: f32[9,4,4], index: 3, kind: input, shape index: {}]   ;;  %s2511_s5 = inlined_call_operand.vmem [shape: f32[4,512], index: 5, kind: output, shape index: {0}]   ;;  %s2512_s6 = inlined_call_operand.vmem [shape: f32[1,4,2], index: 6, kind: output, shape index: {1}]  }
   0x1   :  { %v61_v0 = vld [vmem:[%s2506_s1] sm:$0xf]  ;;  %2103 = vset.pattern.permute.xlu1 %v2108_v1  ;;  %2102 = vset.pattern.permute.xlu0 %v2108_v1  ;;  %v74_v11 = vunpack.c.l.s4 %v2111_v10  ;;  %v59_v20 = vld [vmem:[%s2508_s0 + $0x8] sm:$0xff]  ;;  %s2114_s7 = smov 15   ;;  %s2115_s8 = smov 127   ;;  %v2116_v49 = vmov 0.0  }
   0x2   :  { %v60_v2 = vld [vmem:[%s2507_s2] sm:$0xf]  ;;  %v62_v3 = vmul.f32 0.001953125, %v61_v0  ;;  %v77_v14 = vshrl.u32 %v76_v12, 7  ;;  %299 = vmatprep.mubr.f32.mxu0 %v2116_v49  ;;  %370 = vmatprep.mubr.f32.mxu1 %v2116_v49  ;;  %s2117_s9 = smov 113   ;;  %s2118_s10 = smov 112  }
   0x3   :  { %101 = vperm.xlu1 %2103, %v60_v2   ;;  %v75_v13 = vunpack.c.0.s8 %v74_v11  ;;  %v58_v19 = vld [vmem:[%s2508_s0] sm:$0xff]  ;;  %s2112_s0 = smov 17   ;;  %s2119_s11 = smov 111   ;;  %v2203_v60 = vand.u32 127, %v76_v12  ;;  %vm222_vm1 = vcmask 1043456   ;;  %vm218_vm3 = vcmask 31744  }
   0x4   :  { %v63_v4 = vmul.f32 %v62_v3, %v62_v3  ;;  %v2169_v21 = vsub.s32 0, %v77_v14  ;;  %v2171_v22 = vsub.s32 1, %v77_v14  ;;  %v2173_v25 = vsub.s32 2, %v77_v14  ;;  %v2050_v28 = vld [vmem:[%s2509_s4 + $0x4] ss:$8 sm:$0xf] }
   0x5   :  { %v78_v16 = vsub.s32 %v75_v13, %v77_v14  ;;  %v2175_v26 = vsub.s32 3, %v77_v14  ;;  %v2020_v61 = vld [vmem:[%s2509_s4 + $0x1] ss:$8 sm:$0xf]  ;;  %vm184_vm0 = vcmp.lt.s32.totalorder %v2203_v60, 16  ;;  %vm144_vm2 = vcmp.lt.s32.totalorder %v2203_v60, 17 }
   0x6   :  { %65 = vrot.lane.b32.xlu0 %v63_v4, %s2109_s25  ;;  %v946_v33 = vrot.slane %v2050_v28, %v2169_v21  ;;  %v950_v34 = vrot.slane %v2050_v28, %v2171_v22  ;;  %v954_v36 = vrot.slane %v2050_v28, %v2173_v25  ;;  %v195_v0 = vrot.slane %v2020_v61, %v2169_v21 }
   0x7   :  { %2104 = vset.pattern.permute.xlu1 %v2110_v5  ;;  %v958_v37 = vrot.slane %v2050_v28, %v2175_v26  ;;  %v207_v1 = vrot.slane %v2020_v61, %v2175_v26  ;;  %v203_v11 = vrot.slane %v2020_v61, %v2173_v25  ;;  %v199_v12 = vrot.slane %v2020_v61, %v2171_v22 }
   0x8   :  { %v959_v43 = vcombine.low %v946_v33, %v950_v34  ;;  %vm542_vm4 = vcmp.lt.s32.totalorder %v2203_v60, 15  ;;  %vm745_vm5 = vcmp.lt.s32.totalorder %v2203_v60, 1  ;;  %vm1136_vm6 = vcmp.lt.s32.totalorder %v2203_v60, 127 }
   0x9   :  { %v960_v44 = vcombine.low %v954_v36, %v958_v37  ;;  %vm1339_vm7 = vcmp.lt.s32.totalorder %v2203_v60, 113  ;;  %vm1542_vm8 = vcmp.lt.s32.totalorder %v2203_v60, 112  ;;  %vm1745_vm9 = vcmp.lt.s32.totalorder %v2203_v60, 111 }
   0xa   :  { %71 = vperm.xlu0 %2102, %v62_v3   ;;  %vm1978_vm10 = vcmask 11264   ;;  %vm1972_vm11 = vcmask 7168  }
   0xb   :  { %1979 = vst.msk [vmem:[%s2512_s6] sm:$0xf] %vm1978_vm10, %v2116_v49 }
   0xe   :  { %2105 = vset.pattern.permute.xlu0 %v2110_v5 }
  0x78   :  { %v66_v6 = vpop.permute.xlu0 %65 }
  0x79   :  { %v68_v7 = vsub.f32 %v62_v3, %v66_v6 }
  0x7b   :  { %v83_v8 = vadd.f32 1e-05, %v68_v7 }
  0x7d   :  { %2106 = vrsqrt.f32 %v83_v8 }
  0x7e   :  { %v102_v17 = vpop.permute.xlu1 %101 }
  0x7f   :  { %v109_v30 = vrot.slane %v102_v17, %v78_v16 }
  0x85   :  { %v72_v15 = vpop.permute.xlu0 %71 }
  0x86   :  { %v79_v18 = vrot.slane %v72_v15, %v78_v16 }
  0x88   :  { %v81_v23 = vsub.f32 %v58_v19, %v79_v18  ;;  %v82_v24 = vsub.f32 %v59_v20, %v79_v18 }
  0x8a   :  { %v2107_v9 = vpop.eup %2106 }
  0x8b   :  { %87 = vperm.xlu1 %2104, %v2107_v9  }
  0x8f   :  { %114 = vperm.xlu1 %2104, %v60_v2   ;;  %v149_v2 = vld [vmem:[%s2509_s4] ss:$8 sm:$0xf] }
  0x90   :  { %v158_v7 = vrot.slane %v149_v2, %v2171_v22  ;;  %v162_v8 = vrot.slane %v149_v2, %v2173_v25  ;;  %v154_v15 = vrot.slane %v149_v2, %v2169_v21 }
 0x106   :  { %v88_v27 = vpop.permute.xlu1 %87 }
 0x107   :  { %v95_v29 = vrot.slane %v88_v27, %v78_v16 }
 0x109   :  { %v97_v31 = vmul.f32 %v95_v29, %v81_v23  ;;  %v98_v32 = vmul.f32 %v95_v29, %v82_v24  ;;  %v2034_v23 = vld [vmem:[%s2509_s4 + $0x2] ss:$8 sm:$0xf] }
 0x10a   :  { %v115_v35 = vpop.permute.xlu1 %114  ;;  %v553_v33 = vrot.slane %v2034_v23, %v2169_v21  ;;  %v565_v34 = vrot.slane %v2034_v23, %v2175_v26  ;;  %v557_v37 = vrot.slane %v2034_v23, %v2171_v22 }
 0x10b   :  { %v111_v38 = vmul.f32 %v109_v30, %v97_v31  ;;  %v112_v39 = vmul.f32 %v109_v30, %v98_v32  ;;  %v122_v40 = vrot.slane %v115_v35, %v78_v16  ;;  %v166_v16 = vrot.slane %v149_v2, %v2175_v26  ;;  %v2021_v30 = vld [vmem:[%s2510_s3 + $0x4] sm:$0xf] }
 0x10d   :  { %v124_v41 = vadd.f32 %v122_v40, %v111_v38  ;;  %v125_v42 = vadd.f32 %v122_v40, %v112_v39  ;;  %v2042_v38 = vld [vmem:[%s2509_s4 + $0x3] ss:$8 sm:$0xf] }
 0x10f   :  { %v126_v45 = vmax.f32 %v124_v41, 0.0  ;;  %v127_v46 = vmax.f32 %v125_v42, 0.0  ;;  %v561_v41 = vrot.slane %v2034_v23, %v2173_v25  ;;  %v175_v42 = vld [vmem:[%s2510_s3] sm:$0xf] }
 0x111   :  { %134 = vrot.lane.b32.xlu1 %v126_v45, %s2112_s0  ;;  %176 = vrot.lane.b32.xlu0 %v126_v45, %s2113_s30  ;;  %v2184_v47 = vmul.f32 %v959_v43, %v126_v45  ;;  %v2186_v48 = vmul.f32 %v960_v44, %v127_v46  ;;  %v131_v50 = vcombine.high %v127_v46, %v127_v46 }
 0x112   :  { %v130_v51 = vcombine.high %v126_v45, %v126_v45 }
 0x113   :  { %v970_v23 = vcombine.high %v2186_v48, %v2186_v48 }
 0x115   :  { %180 = vrot.lane.b32.xlu1 %v127_v46, %s2113_s30  ;;  %534 = vrot.lane.b32.xlu0 %v126_v45, %s2114_s7 }
 0x119   :  { %138 = vrot.lane.b32.xlu1 %v127_v46, %s2112_s0  ;;  %737 = vrot.lane.b32.xlu0 %v126_v45, %s2109_s25 }
 0x11d   :  { %538 = vrot.lane.b32.xlu1 %v127_v46, %s2114_s7  ;;  %1128 = vrot.lane.b32.xlu0 %v126_v45, %s2115_s8 }
 0x121   :  { %741 = vrot.lane.b32.xlu1 %v127_v46, %s2109_s25  ;;  %1331 = vrot.lane.b32.xlu0 %v126_v45, %s2117_s9 }
 0x125   :  { %1132 = vrot.lane.b32.xlu1 %v127_v46, %s2115_s8  ;;  %182 = vrot.lane.b32.xlu0 %v131_v50, %s2113_s30 }
 0x129   :  { %136 = vrot.lane.b32.xlu0 %v130_v51, %s2112_s0  ;;  %178 = vrot.lane.b32.xlu1 %v130_v51, %s2113_s30 }
 0x12d   :  { %140 = vrot.lane.b32.xlu0 %v131_v50, %s2112_s0  ;;  %1335 = vrot.lane.b32.xlu1 %v127_v46, %s2117_s9 }
 0x131   :  { %540 = vrot.lane.b32.xlu0 %v131_v50, %s2114_s7  ;;  %536 = vrot.lane.b32.xlu1 %v130_v51, %s2114_s7 }
 0x135   :  { %1534 = vrot.lane.b32.xlu0 %v126_v45, %s2118_s10  ;;  %739 = vrot.lane.b32.xlu1 %v130_v51, %s2109_s25 }
 0x139   :  { %743 = vrot.lane.b32.xlu0 %v131_v50, %s2109_s25  ;;  %1538 = vrot.lane.b32.xlu1 %v127_v46, %s2118_s10 }
 0x13d   :  { %1130 = vrot.lane.b32.xlu0 %v130_v51, %s2115_s8  ;;  %1741 = vrot.lane.b32.xlu1 %v127_v46, %s2119_s11  ;;  %v764_v46 = vrot.slane %v2042_v38, %v2173_v25 }
 0x141   :  { %1333 = vrot.lane.b32.xlu0 %v130_v51, %s2117_s9  ;;  %1134 = vrot.lane.b32.xlu1 %v131_v50, %s2115_s8 }
 0x145   :  { %1536 = vrot.lane.b32.xlu0 %v130_v51, %s2118_s10  ;;  %1337 = vrot.lane.b32.xlu1 %v131_v50, %s2117_s9 }
 0x149   :  { %1739 = vrot.lane.b32.xlu0 %v130_v51, %s2119_s11  ;;  %1540 = vrot.lane.b32.xlu1 %v131_v50, %s2118_s10 }
 0x14d   :  { %1737 = vrot.lane.b32.xlu0 %v126_v45, %s2119_s11  ;;  %1743 = vrot.lane.b32.xlu1 %v131_v50, %s2119_s11  ;;  %v760_v45 = vrot.slane %v2042_v38, %v2171_v22 }
 0x183   :  { %v135_v52 = vpop.permute.xlu1 %134  ;;  %v177_v53 = vpop.permute.xlu0 %176 }
 0x187   :  { %v181_v54 = vpop.permute.xlu1 %180  ;;  %v2194_v55 = vpop.permute.xlu0 %534 }
 0x18b   :  { %v139_v56 = vpop.permute.xlu1 %138  ;;  %v2196_v57 = vpop.permute.xlu0 %737 }
 0x18f   :  { %v2198_v58 = vpop.permute.xlu1 %538  ;;  %v2200_v59 = vpop.permute.xlu0 %1128 }
 0x193   :  { %v2208_v62 = vpop.permute.xlu1 %741  ;;  %v2210_v63 = vpop.permute.xlu0 %1331 }
 0x197   :  { %v2218_v3 = vpop.permute.xlu1 %1132  ;;  %v183_v4 = vpop.permute.xlu0 %182 }
 0x198   :  { %v185_v5 = vsel %vm184_vm0, %v181_v54, %v183_v4  ;;  %v188_v6 = vsel %vm184_vm0, %v183_v4, %v177_v53 }
 0x199   :  { %v212_v9 = vmul.f32 %v195_v0, %v188_v6  ;;  %v215_v10 = vmul.f32 %v207_v1, %v185_v5  ;;  %v2035_v1 = vld [vmem:[%s2510_s3 + $0x8] sm:$0xf]  ;;  %v756_v5 = vrot.slane %v2042_v38, %v2169_v21 }
 0x19b   :  { %2025 = vmatprep.subr.msk.mxu1 %vm222_vm1, %v215_v10  ;;  %v137_v13 = vpop.permute.xlu0 %136  ;;  %v179_v14 = vpop.permute.xlu1 %178 }
 0x19c   :  { %v146_v17 = vsel %vm144_vm2, %v137_v13, %v139_v56  ;;  %v147_v18 = vsel %vm144_vm2, %v135_v52, %v137_v13  ;;  %v186_v19 = vsel %vm184_vm0, %v179_v14, %v181_v54  ;;  %v187_v20 = vsel %vm184_vm0, %v177_v53, %v179_v14  ;;  %v2322_v14 = vld [vmem:[%s2509_s4 + $0x6] ss:$8 sm:$0xf] }
 0x19d   :  { %v172_v24 = vmul.f32 %v158_v7, %v147_v18  ;;  %v173_v27 = vmul.f32 %v162_v8, %v146_v17  ;;  %v214_v28 = vmul.f32 %v203_v11, %v186_v19  ;;  %v213_v29 = vmul.f32 %v199_v12, %v187_v20 }
 0x19e   :  { %v768_v8 = vrot.slane %v2042_v38, %v2175_v26 }
 0x19f   :  { %v141_v31 = vpop.permute.xlu0 %140  ;;  %2022 = vmatprep.subr.msk.mxu0 %vm222_vm1, %v213_v29  ;;  %2026 = vmatpush1.msk.msra.mxu1 %vm222_vm1, %v214_v28  ;;  %v2248_v32 = vpop.permute.xlu1 %1335 }
 0x1a0   :  { %v145_v35 = vsel %vm144_vm2, %v139_v56, %v141_v31  ;;  %v148_v36 = vsel %vm144_vm2, %v141_v31, %v135_v52  ;;  %2023 = vmatpush1.msk.msra.mxu0 %vm222_vm1, %v212_v9  ;;  %2027 = vmatmul.mubr.msk.f32.vlgmr.msra.gmra.mxu1 %vm218_vm3, %v2021_v30  ;;  %v2058_v9 = vld [vmem:[%s2509_s4 + $0x5] ss:$8 sm:$0xf]  ;;  %v2353_v31 = vld [vmem:[%s2509_s4 + $0x7] ss:$8 sm:$0xf] }
 0x1a1   :  { %v171_v39 = vmul.f32 %v154_v15, %v148_v36  ;;  %v174_v40 = vmul.f32 %v166_v16, %v145_v35  ;;  %2024 = vmatmul.mubr.msk.f32.vlgmr.msra.gmra.mxu0 %vm218_vm3, %v2021_v30  ;;  %2028 = vmatprep.subr.msk.mxu0 %vm222_vm1, %v172_v24  ;;  %v1147_v17 = vrot.slane %v2058_v9, %v2169_v21  ;;  %v2051_v36 = vld [vmem:[%s2510_s3 + $0x10] sm:$0xf] }
 0x1a2   :  { %456 = vmatprep.mubr.f32.mxu0 %v2116_v49  ;;  %527 = vmatprep.mubr.f32.mxu1 %v2116_v49  ;;  %v1151_v18 = vrot.slane %v2058_v9, %v2171_v22  ;;  %v1350_v24 = vrot.slane %v2322_v14, %v2169_v21  ;;  %v1155_v30 = vrot.slane %v2058_v9, %v2173_v25 }
 0x1a3   :  { %v541_v43 = vpop.permute.xlu0 %540  ;;  %2029 = vmatpush1.msk.msra.mxu0 %vm222_vm1, %v171_v39  ;;  %2031 = vmatprep.subr.msk.mxu1 %vm222_vm1, %v174_v40  ;;  %v537_v44 = vpop.permute.xlu1 %536  ;;  %v1159_v35 = vrot.slane %v2058_v9, %v2175_v26  ;;  %v1553_v39 = vrot.slane %v2353_v31, %v2169_v21  ;;  %v1358_v40 = vrot.slane %v2322_v14, %v2173_v25 }
 0x1a4   :  { %v543_v50 = vsel %vm542_vm4, %v2198_v58, %v541_v43  ;;  %v546_v51 = vsel %vm542_vm4, %v541_v43, %v2194_v55  ;;  %v544_v52 = vsel %vm542_vm4, %v537_v44, %v2198_v58  ;;  %v545_v53 = vsel %vm542_vm4, %v2194_v55, %v537_v44  ;;  %2032 = vmatpush1.msk.msra.mxu1 %vm222_vm1, %v173_v27  ;;  %v2391_v44 = vld [vmem:[%s2509_s4 + $0x20] ss:$8 sm:$0xf] }
 0x1a5   :  { %v570_v54 = vmul.f32 %v553_v33, %v546_v51  ;;  %v573_v56 = vmul.f32 %v565_v34, %v543_v50  ;;  %v571_v61 = vmul.f32 %v557_v37, %v545_v53  ;;  %v572_v0 = vmul.f32 %v561_v41, %v544_v52  ;;  %2030 = vmatmul.mubr.msk.f32.vlgmr.msra.gmra.mxu0 %vm218_vm3, %v175_v42 }
 0x1a6   :  { %2033 = vmatmul.mubr.msk.f32.vlgmr.msra.gmra.mxu1 %vm218_vm3, %v175_v42  ;;  %655 = vmatprep.mubr.f32.mxu0 %v2116_v49  ;;  %v1354_v27 = vrot.slane %v2322_v14, %v2171_v22  ;;  %v1764_v9 = vrot.slane %v2391_v44, %v2173_v25 }
 0x1a7   :  { %v2287_v2 = vpop.permute.xlu0 %1534  ;;  %2036 = vmatprep.subr.msk.mxu0 %vm222_vm1, %v571_v61  ;;  %2039 = vmatprep.subr.msk.mxu1 %vm222_vm1, %v573_v56  ;;  %v740_v55 = vpop.permute.xlu1 %739  ;;  %v1561_v56 = vrot.slane %v2353_v31, %v2173_v25  ;;  %v1565_v61 = vrot.slane %v2353_v31, %v2175_v26 }
 0x1a8   :  { %v747_v58 = vsel %vm745_vm5, %v740_v55, %v2208_v62  ;;  %v748_v4 = vsel %vm745_vm5, %v2196_v57, %v740_v55  ;;  %2037 = vmatpush1.msk.msra.mxu0 %vm222_vm1, %v570_v54  ;;  %2040 = vmatpush1.msk.msra.mxu1 %vm222_vm1, %v572_v0  ;;  %v1760_v54 = vrot.slane %v2391_v44, %v2171_v22 }
 0x1a9   :  { %v774_v6 = vmul.f32 %v760_v45, %v748_v4  ;;  %v775_v7 = vmul.f32 %v764_v46, %v747_v58  ;;  %2038 = vmatmul.mubr.msk.f32.vlgmr.msra.gmra.mxu0 %vm218_vm3, %v2035_v1  ;;  %726 = vmatprep.mubr.f32.mxu1 %v2116_v49 }
 0x1aa   :  { %2041 = vmatmul.mubr.msk.f32.vlgmr.msra.gmra.mxu1 %vm218_vm3, %v2035_v1  ;;  %858 = vmatprep.mubr.f32.mxu0 %v2116_v49 }
 0x1ab   :  { %v744_v10 = vpop.permute.xlu0 %743  ;;  %2044 = vmatprep.subr.msk.mxu0 %vm222_vm1, %v774_v6  ;;  %v2309_v11 = vpop.permute.xlu1 %1538  ;;  %929 = vmatprep.mubr.f32.mxu1 %v2116_v49 }
 0x1ac   :  { %v746_v12 = vsel %vm745_vm5, %v2208_v62, %v744_v10  ;;  %v749_v13 = vsel %vm745_vm5, %v744_v10, %v2196_v57  ;;  %v2043_v62 = vld [vmem:[%s2510_s3 + $0xc] sm:$0xf]  ;;  %v969_v57 = vcombine.high %v2184_v47, %v2184_v47  ;;  %v1768_v10 = vrot.slane %v2391_v44, %v2175_v26 }
 0x1ad   :  { %v773_v15 = vmul.f32 %v756_v5, %v749_v13  ;;  %v776_v16 = vmul.f32 %v768_v8, %v746_v12 }
 0x1af   :  { %v1131_v19 = vpop.permute.xlu0 %1130  ;;  %2045 = vmatpush1.msk.msra.mxu0 %vm222_vm1, %v773_v15  ;;  %2047 = vmatprep.subr.msk.mxu1 %vm222_vm1, %v776_v16  ;;  %v2333_v20 = vpop.permute.xlu1 %1741  ;;  %v2075_v15 = vld [vmem:[%s2510_s3 + $0x1c] sm:$0xf] }
 0x1b0   :  { %v1138_v28 = vsel %vm1136_vm6, %v1131_v19, %v2218_v3  ;;  %v1139_v29 = vsel %vm1136_vm6, %v2200_v59, %v1131_v19  ;;  %2046 = vmatmul.mubr.msk.f32.vlgmr.msra.gmra.mxu0 %vm218_vm3, %v2043_v62  ;;  %2048 = vmatpush1.msk.msra.mxu1 %vm222_vm1, %v775_v7 }
 0x1b1   :  { %v1164_v33 = vmul.f32 %v1147_v17, %v1139_v29  ;;  %v1165_v34 = vmul.f32 %v1151_v18, %v1138_v28  ;;  %2052 = vmatprep.subr.msk.mxu0 %vm222_vm1, %v969_v57  ;;  %2049 = vmatmul.mubr.msk.f32.vlgmr.msra.gmra.mxu1 %vm218_vm3, %v2043_v62 }
 0x1b2   :  { %2053 = vmatpush1.msk.msra.mxu0 %vm222_vm1, %v2184_v47  ;;  %2055 = vmatprep.subr.msk.mxu1 %vm222_vm1, %v970_v23  ;;  %v1557_v47 = vrot.slane %v2353_v31, %v2171_v22  ;;  %v2083_v23 = vld [vmem:[%s2510_s3 + $0x20] sm:$0xf] }
 0x1b3   :  { %2056 = vmatpush1.msk.msra.mxu1 %vm222_vm1, %v2186_v48  ;;  %v1334_v37 = vpop.permute.xlu0 %1333  ;;  %1046 = vmatprep.mubr.f32.mxu0 %v2116_v49  ;;  %v1135_v38 = vpop.permute.xlu1 %1134 }
 0x1b4   :  { %v1341_v41 = vsel %vm1339_vm7, %v1334_v37, %v2248_v32  ;;  %v1342_v48 = vsel %vm1339_vm7, %v2210_v63, %v1334_v37  ;;  %2060 = vmatprep.subr.msk.mxu0 %vm222_vm1, %v1165_v34  ;;  %v1137_v42 = vsel %vm1136_vm6, %v2218_v3, %v1135_v38  ;;  %v1140_v43 = vsel %vm1136_vm6, %v1135_v38, %v2200_v59  ;;  %v2059_v59 = vld [vmem:[%s2510_s3 + $0x14] sm:$0xf] }
 0x1b5   :  { %v1367_v45 = vmul.f32 %v1350_v24, %v1342_v48  ;;  %v1368_v46 = vmul.f32 %v1354_v27, %v1341_v41  ;;  %v1166_v50 = vmul.f32 %v1155_v30, %v1137_v42  ;;  %v1167_v51 = vmul.f32 %v1159_v35, %v1140_v43  ;;  %2054 = vmatmul.mubr.msk.f32.vlgmr.msra.gmra.mxu0 %vm218_vm3, %v2051_v36 }
 0x1b6   :  { %1117 = vmatprep.mubr.f32.mxu1 %v2116_v49  ;;  %2061 = vmatpush1.msk.msra.mxu0 %vm222_vm1, %v1164_v33  ;;  %v1362_v3 = vrot.slane %v2322_v14, %v2175_v26 }
 0x1b7   :  { %2057 = vmatmul.mubr.msk.f32.vlgmr.msra.gmra.mxu1 %vm218_vm3, %v2051_v36  ;;  %v1537_v52 = vpop.permute.xlu0 %1536  ;;  %1249 = vmatprep.mubr.f32.mxu0 %v2116_v49  ;;  %v1338_v53 = vpop.permute.xlu1 %1337 }
 0x1b8   :  { %v1544_v0 = vsel %vm1542_vm8, %v1537_v52, %v2309_v11  ;;  %v1545_v1 = vsel %vm1542_vm8, %v2287_v2, %v1537_v52  ;;  %2063 = vmatprep.subr.msk.mxu1 %vm222_vm1, %v1167_v51  ;;  %2068 = vmatprep.subr.msk.mxu0 %vm222_vm1, %v1368_v46  ;;  %v1340_v22 = vsel %vm1339_vm7, %v2248_v32, %v1338_v53  ;;  %v2067_v32 = vld [vmem:[%s2510_s3 + $0x18] sm:$0xf] }
 0x1b9   :  { %v1570_v55 = vmul.f32 %v1553_v39, %v1545_v1  ;;  %v1571_v58 = vmul.f32 %v1557_v47, %v1544_v0  ;;  %v1343_v4 = vsel %vm1339_vm7, %v1338_v53, %v2210_v63  ;;  %v1369_v5 = vmul.f32 %v1358_v40, %v1340_v22  ;;  %2062 = vmatmul.mubr.msk.f32.vlgmr.msra.gmra.mxu0 %vm218_vm3, %v2059_v59 }
 0x1ba   :  { %v1370_v6 = vmul.f32 %v1362_v3, %v1343_v4  ;;  %2064 = vmatpush1.msk.msra.mxu1 %vm222_vm1, %v1166_v50  ;;  %1320 = vmatprep.mubr.f32.mxu1 %v2116_v49  ;;  %v1756_v63 = vrot.slane %v2391_v44, %v2169_v21 }
 0x1bb   :  { %2069 = vmatpush1.msk.msra.mxu0 %vm222_vm1, %v1367_v45  ;;  %2065 = vmatmul.mubr.msk.f32.vlgmr.msra.gmra.mxu1 %vm218_vm3, %v2059_v59  ;;  %v1740_v7 = vpop.permute.xlu0 %1739  ;;  %v1541_v8 = vpop.permute.xlu1 %1540 }
 0x1bc   :  { %v1747_v12 = vsel %vm1745_vm9, %v1740_v7, %v2333_v20  ;;  %1452 = vmatprep.mubr.f32.mxu0 %v2116_v49  ;;  %2071 = vmatprep.subr.msk.mxu1 %vm222_vm1, %v1370_v6  ;;  %v1543_v13 = vsel %vm1542_vm8, %v2309_v11, %v1541_v8  ;;  %v1546_v21 = vsel %vm1542_vm8, %v1541_v8, %v2287_v2 }
 0x1bd   :  { %v1774_v25 = vmul.f32 %v1760_v54, %v1747_v12  ;;  %2076 = vmatprep.subr.msk.mxu0 %vm222_vm1, %v1571_v58  ;;  %v1572_v26 = vmul.f32 %v1561_v56, %v1543_v13  ;;  %v1573_v14 = vmul.f32 %v1565_v61, %v1546_v21  ;;  %2070 = vmatmul.mubr.msk.f32.vlgmr.msra.gmra.mxu0 %vm218_vm3, %v2067_v32 }
 0x1be   :  { %2072 = vmatpush1.msk.msra.mxu1 %vm222_vm1, %v1369_v5  ;;  %1523 = vmatprep.mubr.f32.mxu1 %v2116_v49 }
 0x1bf   :  { %2077 = vmatpush1.msk.msra.mxu0 %vm222_vm1, %v1570_v55  ;;  %2073 = vmatmul.mubr.msk.f32.vlgmr.msra.gmra.mxu1 %vm218_vm3, %v2067_v32  ;;  %v1738_v2 = vpop.permute.xlu0 %1737  ;;  %v1744_v11 = vpop.permute.xlu1 %1743 }
 0x1c0   :  { %v1748_v16 = vsel %vm1745_vm9, %v1738_v2, %v1740_v7  ;;  %1655 = vmatprep.mubr.f32.mxu0 %v2116_v49  ;;  %2079 = vmatprep.subr.msk.mxu1 %vm222_vm1, %v1573_v14  ;;  %v1746_v17 = vsel %vm1745_vm9, %v2333_v20, %v1744_v11  ;;  %v1749_v18 = vsel %vm1745_vm9, %v1744_v11, %v1738_v2 }
 0x1c1   :  { %v1773_v62 = vmul.f32 %v1756_v63, %v1748_v16  ;;  %2084 = vmatprep.subr.msk.mxu0 %vm222_vm1, %v1774_v25  ;;  %v1775_v57 = vmul.f32 %v1764_v9, %v1746_v17  ;;  %v1776_v19 = vmul.f32 %v1768_v10, %v1749_v18  ;;  %2078 = vmatmul.mubr.msk.f32.vlgmr.msra.gmra.mxu0 %vm218_vm3, %v2075_v15 }
 0x1c2   :  { %2080 = vmatpush1.msk.msra.mxu1 %vm222_vm1, %v1572_v26  ;;  %1726 = vmatprep.mubr.f32.mxu1 %v2116_v49 }
 0x1c3   :  { %2081 = vmatmul.mubr.msk.f32.vlgmr.msra.gmra.mxu1 %vm218_vm3, %v2075_v15  ;;  %2085 = vmatpush1.msk.msra.mxu0 %vm222_vm1, %v1773_v62 }
 0x1c4   :  { %1858 = vmatprep.mubr.f32.mxu0 %v2116_v49  ;;  %2087 = vmatprep.subr.msk.mxu1 %vm222_vm1, %v1776_v19 }
 0x1c5   :  { %2086 = vmatmul.mubr.msk.f32.vlgmr.msra.gmra.mxu0 %vm218_vm3, %v2083_v23  ;;  %2088 = vmatpush1.msk.msra.mxu1 %vm222_vm1, %v1775_v57 }
 0x1c6   :  { %1929 = vmatprep.mubr.f32.mxu1 %v2116_v49 }
 0x1c7   :  { %2089 = vmatmul.mubr.msk.f32.vlgmr.msra.gmra.mxu1 %vm218_vm3, %v2083_v23 }
 0x260   :  { %v372_v60 = vpop.f32.mrf.mxu1 }
 0x261   :  { %v301_v20 = vpop.f32.mrf.mxu0 }
 0x262   :  { %v374_v24 = vpop.f32.mrf.mxu1 }
 0x263   :  { %v303_v27 = vpop.f32.mrf.mxu0 }
 0x265   :  { %v458_v28 = vpop.f32.mrf.mxu0 }
 0x266   :  { %v529_v29 = vpop.f32.mrf.mxu1  ;;  %v459_v42 = vadd.f32 %v458_v28, %v301_v20 }
 0x267   :  { %v460_v30 = vpop.f32.mrf.mxu0  ;;  %v530_v43 = vadd.f32 %v529_v29, %v372_v60 }
 0x268   :  { %v531_v31 = vpop.f32.mrf.mxu1  ;;  %v461_v46 = vadd.f32 %v460_v30, %v303_v27 }
 0x269   :  { %v657_v33 = vpop.f32.mrf.mxu0  ;;  %v532_v51 = vadd.f32 %v531_v31, %v374_v24 }
 0x26a   :  { %v728_v34 = vpop.f32.mrf.mxu1  ;;  %v733_v50 = vadd.f32 %v657_v33, %v459_v42 }
 0x26b   :  { %v659_v35 = vpop.f32.mrf.mxu0  ;;  %v735_v53 = vadd.f32 %v728_v34, %v530_v43 }
 0x26c   :  { %v730_v36 = vpop.f32.mrf.mxu1  ;;  %v734_v52 = vadd.f32 %v659_v35, %v461_v46 }
 0x26d   :  { %v736_v55 = vadd.f32 %v730_v36, %v532_v51  ;;  %v1980_v51 = vld [vmem:[%s2512_s6] sm:$0xf] }
 0x270   :  { %v860_v37 = vpop.f32.mrf.mxu0 }
 0x271   :  { %v931_v38 = vpop.f32.mrf.mxu1  ;;  %v936_v54 = vadd.f32 %v860_v37, %v733_v50 }
 0x272   :  { %v862_v39 = vpop.f32.mrf.mxu0  ;;  %v938_v0 = vadd.f32 %v931_v38, %v735_v53 }
 0x273   :  { %v933_v47 = vpop.f32.mrf.mxu1  ;;  %v937_v1 = vadd.f32 %v862_v39, %v734_v52 }
 0x274   :  { %v939_v7 = vadd.f32 %v933_v47, %v736_v55 }
 0x275   :  { %v1048_v40 = vpop.f32.mrf.mxu0 }
 0x276   :  { %v1124_v22 = vadd.f32 %v1048_v40, %v936_v54 }
 0x277   :  { %v1119_v41 = vpop.f32.mrf.mxu1  ;;  %v1050_v48 = vpop.f32.mrf.mxu0 }
 0x278   :  { %v1126_v5 = vadd.f32 %v1119_v41, %v938_v0  ;;  %v1125_v6 = vadd.f32 %v1050_v48, %v937_v1 }
 0x279   :  { %v1121_v44 = vpop.f32.mrf.mxu1  ;;  %v1251_v45 = vpop.f32.mrf.mxu0 }
 0x27a   :  { %v1327_v32 = vadd.f32 %v1251_v45, %v1124_v22  ;;  %v1127_v13 = vadd.f32 %v1121_v44, %v939_v7 }
 0x27b   :  { %v1322_v3 = vpop.f32.mrf.mxu1  ;;  %v1253_v59 = vpop.f32.mrf.mxu0 }
 0x27c   :  { %v1329_v9 = vadd.f32 %v1322_v3, %v1126_v5  ;;  %v1328_v10 = vadd.f32 %v1253_v59, %v1125_v6 }
 0x27d   :  { %v1324_v56 = vpop.f32.mrf.mxu1  ;;  %v1454_v61 = vpop.f32.mrf.mxu0 }
 0x27e   :  { %v1530_v12 = vadd.f32 %v1454_v61, %v1327_v32  ;;  %v1330_v2 = vadd.f32 %v1324_v56, %v1127_v13 }
 0x27f   :  { %v1525_v58 = vpop.f32.mrf.mxu1  ;;  %v1456_v4 = vpop.f32.mrf.mxu0 }
 0x280   :  { %v1532_v26 = vadd.f32 %v1525_v58, %v1329_v9  ;;  %v1531_v14 = vadd.f32 %v1456_v4, %v1328_v10 }
 0x281   :  { %v1527_v8 = vpop.f32.mrf.mxu1  ;;  %v1657_v63 = vpop.f32.mrf.mxu0 }
 0x282   :  { %v1733_v15 = vadd.f32 %v1657_v63, %v1530_v12  ;;  %v1533_v57 = vadd.f32 %v1527_v8, %v1330_v2 }
 0x283   :  { %v1728_v21 = vpop.f32.mrf.mxu1  ;;  %v1659_v25 = vpop.f32.mrf.mxu0 }
 0x284   :  { %v1735_v17 = vadd.f32 %v1728_v21, %v1532_v26  ;;  %v1734_v18 = vadd.f32 %v1659_v25, %v1531_v14 }
 0x285   :  { %v1730_v11 = vpop.f32.mrf.mxu1  ;;  %v1860_v16 = vpop.f32.mrf.mxu0 }
 0x286   :  { %v1936_v62 = vadd.f32 %v1860_v16, %v1733_v15  ;;  %v1736_v24 = vadd.f32 %v1730_v11, %v1533_v57 }
 0x287   :  { %v1931_v19 = vpop.f32.mrf.mxu1  ;;  %v1862_v23 = vpop.f32.mrf.mxu0 }
 0x288   :  { %v1938_v60 = vadd.f32 %v1931_v19, %v1735_v17  ;;  %v1937_v20 = vadd.f32 %v1862_v23, %v1734_v18  ;;  %v1959_v27 = vmul.f32 %v1936_v62, %v1936_v62  ;;  %v1950_v29 = vsel %vm222_vm1, %v1936_v62, 0.0 }
 0x289   :  { %v1933_v28 = vpop.f32.mrf.mxu1 }
 0x28a   :  { %v1944_v30 = vcombine.low %v1936_v62, %v1937_v20  ;;  %v1951_v31 = vsel %vm222_vm1, %v1937_v20, 0.0  ;;  %v1960_v33 = vmul.f32 %v1937_v20, %v1937_v20  ;;  %v1961_v34 = vmul.f32 %v1938_v60, %v1938_v60 }
 0x28b   :  { %v1939_v35 = vadd.f32 %v1933_v28, %v1736_v24  ;;  %v1952_v36 = vadd.f32 %v1951_v31, %v1950_v29  ;;  %v1953_v37 = vsel %vm222_vm1, %v1938_v60, 0.0  ;;  %v1963_v41 = vsel %vm222_vm1, %v1959_v27, 0.0 }
 0x28c   :  { %1948 = vst [vmem:[%s2511_s5] sm:$0xff] %v1944_v30  ;;  %v1964_v38 = vsel %vm222_vm1, %v1960_v33, 0.0  ;;  %v1966_v44 = vsel %vm222_vm1, %v1961_v34, 0.0 }
 0x28d   :  { %v1945_v39 = vcombine.low %v1938_v60, %v1939_v35  ;;  %v1954_v47 = vadd.f32 %v1953_v37, %v1952_v36  ;;  %v1962_v40 = vmul.f32 %v1939_v35, %v1939_v35  ;;  %v1955_v48 = vsel %vm222_vm1, %v1939_v35, 0.0 }
 0x28e   :  { %v1965_v42 = vadd.f32 %v1964_v38, %v1963_v41 }
 0x28f   :  { %1949 = vst [vmem:[%s2511_s5 + $0x8] sm:$0xff] %v1945_v39  ;;  %v1956_v43 = vadd.f32 %v1955_v48, %v1954_v47  ;;  %v1968_v46 = vsel %vm222_vm1, %v1962_v40, 0.0 }
 0x290   :  { %v1967_v45 = vadd.f32 %v1966_v44, %v1965_v42 }
 0x291   :  { %1957 = vadd.xlane.f32.xlu0 %v1956_v43 }
 0x292   :  { %v1969_v50 = vadd.f32 %v1968_v46, %v1967_v45 }
 0x294   :  { %1970 = vadd.xlane.f32.xlu1 %v1969_v50 }
 0x31a   :  { %v1958_v3 = vpop.xlane.xlu0 %1957 }
 0x31d   :  { %v1971_v59 = vpop.xlane.xlu1 %1970 }
 0x31e   :  { %v1973_v52 = vsel %vm1972_vm11, %v1958_v3, %v1971_v59 }
 0x31f   :  { %v1981_v53 = vadd.f32 %v1980_v51, %v1973_v52 }
 0x321   :  { %1983 = vst.msk [vmem:[%s2512_s6] sm:$0xf] %vm1978_vm10, %v1981_v53 }

</bundles_post_ra>
